<compile_context>
chip_gen: v7x
topology: tpu7x:2x2x1
jax: 0.10.0
libtpu: 0.0.40
codegen_flags: <defaults>
</compile_context>

<pallas_src>
import numpy as np
import jax
import jax.numpy as jnp
from jax.experimental import pallas as pl
from jax.experimental.pallas import tpu as pltpu


# Flattened activation widths (all multiples of 128).
N0 = 128                 # input features
N1 = 64 * 2 * 2          # 256  : layer-1 output (64ch, 2x2)
N2 = 64 * 4 * 4          # 1024 : layer-2 output (64ch, 4x4)
N3_VALID = 4 * 10 * 10   # 400  : layer-3 output (4ch, 10x10)
N3_PAD = 512             # lane-dense padded width for the final matmul/store
NB = N1 + N2 + N3_PAD    # 1792 : packed bias buffer width


# ---------------------------------------------------------------------------
# Pallas kernel: x -> silu(x@W1+b1) -> silu(.@W2+b2) -> .@W3+b3   (padded out)
# ---------------------------------------------------------------------------
def recon_kernel(x_ref, w1_ref, w2_ref, w3_ref, b_ref, o_ref):
    def silu(h):
        # f32 elementwise; exp and the approx reciprocal both go to the EUP slot.
        return h * pl.reciprocal(1.0 + jnp.exp(-h), approx=True)

    x = x_ref[...].astype(jnp.bfloat16)                        # bf16 MXU path
    h1 = jnp.dot(x, w1_ref[...],
                 preferred_element_type=jnp.float32) + b_ref[:, 0:N1]
    h1 = silu(h1)
    h2 = jnp.dot(h1.astype(jnp.bfloat16), w2_ref[...],
                 preferred_element_type=jnp.float32) + b_ref[:, N1:N1 + N2]
    h2 = silu(h2)
    o_ref[...] = jnp.dot(h2.astype(jnp.bfloat16), w3_ref[...],
                         preferred_element_type=jnp.float32) + b_ref[:, N1 + N2:NB]


# ---------------------------------------------------------------------------
# Glue: ConvTranspose2d (PyTorch weight layout (Cin, Cout, K, K)) on an
# Hin x Win input -> exact dense matrix + bias row (flattened NCHW order).
# ---------------------------------------------------------------------------
def deconv_as_dense(w, b, hin, win, stride, padding):
    cin, cout, k, _ = w.shape
    hout = (hin - 1) * stride - 2 * padding + k
    wout = (win - 1) * stride - 2 * padding + k

    iy = jnp.arange(hin)
    ix = jnp.arange(win)
    oy = jnp.arange(hout)
    ox = jnp.arange(wout)

    ky = oy[None, :] - iy[:, None] * stride + padding          # (Hin, Hout)
    kx = ox[None, :] - ix[:, None] * stride + padding          # (Win, Wout)
    vy = (ky >= 0) & (ky < k)
    vx = (kx >= 0) & (kx < k)
    kyc = jnp.clip(ky, 0, k - 1)
    kxc = jnp.clip(kx, 0, k - 1)

    # M[ic, oc, iy, oy, ix, ox] = w[ic, oc, ky, kx] (masked to valid taps)
    M = w[:, :, kyc[:, :, None, None], kxc[None, None, :, :]]
    valid = (vy[:, :, None, None] & vx[None, None, :, :]).astype(w.dtype)
    M = M * valid[None, None]
    # -> (Cin, Hin, Win, Cout, Hout, Wout) -> (Cin*Hin*Win, Cout*Hout*Wout)
    M = M.transpose(0, 2, 4, 1, 3, 5).reshape(cin * hin * win, cout * hout * wout)

    bvec = jnp.broadcast_to(b[:, None, None], (cout, hout, wout)).reshape(1, -1)
    return M, bvec, (cout, hout, wout)


# ---------------------------------------------------------------------------
# Wrapper: build the dense maps once (bf16, lane-padded, packed biases),
# run the Pallas kernel under jit.
# ---------------------------------------------------------------------------
def make_reconstruction_forward(params, in_channels):
    (w1, b1), (w2, b2), (w3, b3) = params
    M1, B1, _ = deconv_as_dense(w1, b1, 1, 1, stride=2, padding=1)
    M2, B2, _ = deconv_as_dense(w2, b2, 2, 2, stride=2, padding=1)
    M3, B3, out_chw = deconv_as_dense(w3, b3, 4, 4, stride=2, padding=1)

    # bf16 weights (f32 accumulation happens inside the kernel).
    W1 = M1.astype(jnp.bfloat16)                                   # (128, 256)
    W2 = M2.astype(jnp.bfloat16)                                   # (256, 1024)
    # Lane-dense final layer: pad 400 -> 512 output columns (zeros).
    W3 = jnp.pad(M3, ((0, 0), (0, N3_PAD - N3_VALID))).astype(jnp.bfloat16)  # (1024, 512)
    # One packed f32 bias buffer -> a single small DMA instead of three.
    Bpk = jnp.concatenate(
        [B1, B2, jnp.pad(B3, ((0, 0), (0, N3_PAD - N3_VALID)))], axis=1
    ).astype(jnp.float32)                                          # (1, 1792)

    def forward(x):
        assert x.shape[1] == in_channels
        batch = x.shape[0]
        # Sublane-dense batch: pad to a multiple of 8 (static, trivial cost).
        batch_pad = -(-batch // 8) * 8
        xp = jnp.pad(x, ((0, batch_pad - batch), (0, 0)))
        args = (xp, W1, W2, W3, Bpk)
        y = pl.pallas_call(
            recon_kernel,
            out_shape=jax.ShapeDtypeStruct((batch_pad, N3_PAD), jnp.float32),
            in_specs=[pl.BlockSpec(memory_space=pltpu.MemorySpace.VMEM)
                      for _ in args],
            out_specs=pl.BlockSpec(memory_space=pltpu.MemorySpace.VMEM),
        )(*args)
        # Drop the batch/lane padding and restore NCHW: (B, 4, 10, 10).
        return y[:batch, :N3_VALID].reshape(batch, *out_chw)

    # Weights stay closure constants under jit (no per-call relayout).
    return jax.jit(forward)


# ---------------------------------------------------------------------------
# Deterministic parameter init (synthetic; shapes match nn.ConvTranspose2d)
# ---------------------------------------------------------------------------
def init_deconv(key, cin, cout, k):
    wk, bk = jax.random.split(key)
    bound = 1.0 / np.sqrt(cin * k * k)
    w = jax.random.uniform(wk, (cin, cout, k, k), jnp.float32, -bound, bound)
    b = jax.random.uniform(bk, (cout,), jnp.float32, -bound, bound)
    return w, b


# ---------------------------------------------------------------------------
# Pure-numpy reference (naive ConvTranspose2d loops) for correctness checking
# ---------------------------------------------------------------------------
def ref_deconv(x, w, b, stride, padding):
    bsz, cin, hin, win = x.shape
    _, cout, k, _ = w.shape
    hout = (hin - 1) * stride - 2 * padding + k
    wout = (win - 1) * stride - 2 * padding + k
    out = np.zeros((bsz, cout, hout, wout), dtype=np.float64)
    for bb in range(bsz):
        for ic in range(cin):
            for iy in range(hin):
                for ix in range(win):
                    for ky in range(k):
                        oy = iy * stride - padding + ky
                        if oy < 0 or oy >= hout:
                            continue
                        for kx in range(k):
                            ox = ix * stride - padding + kx
                            if ox < 0 or ox >= wout:
                                continue
                            out[bb, :, oy, ox] += x[bb, ic, iy, ix] * w[ic, :, ky, kx]
    return out + b[None, :, None, None]


def ref_silu(x):
    return x * (1.0 / (1.0 + np.exp(-x)))


def ref_forward(x, params):
    (w1, b1), (w2, b2), (w3, b3) = [(np.asarray(w, np.float64), np.asarray(b, np.float64))
                                    for (w, b) in params]
    x = np.asarray(x, np.float64)[:, :, None, None]          # Unflatten -> (B, Cin, 1, 1)
    h = ref_silu(ref_deconv(x, w1, b1, 2, 1))
    h = ref_silu(ref_deconv(h, w2, b2, 2, 1))
    return ref_deconv(h, w3, b3, 2, 1)


if __name__ == "__main__":
    in_channels, num_channels, batch = 128, 64, 2

    key = jax.random.PRNGKey(0)
    k1, k2, k3, kx = jax.random.split(key, 4)
    params = (
        init_deconv(k1, in_channels, num_channels, 4),
        init_deconv(k2, num_channels, num_channels, 4),
        init_deconv(k3, num_channels, 4, 6),
    )
    x = jax.random.normal(kx, (batch, in_channels), jnp.float32)

    forward = make_reconstruction_forward(params, in_channels)
    out = jax.block_until_ready(forward(x))
    assert out.shape == (batch, 4, 10, 10), out.shape

    ref = ref_forward(x, params)
    # bf16-quantized weights/activations + approx reciprocal in SiLU
    # => loosen tolerance vs. the f64 reference.
    np.testing.assert_allclose(np.asarray(out, np.float64), ref, rtol=2e-2, atol=2e-2)

    print("KERNEL_OK")
</pallas_src>

<mosaic_0001>
module attributes {stable_mosaic.version = 11 : i64} {
  func.func @recon_kernel(%arg0: memref<8x128xf32, #tpu.memory_space<vmem>>, %arg1: memref<128x256xbf16, #tpu.memory_space<vmem>>, %arg2: memref<256x1024xbf16, #tpu.memory_space<vmem>>, %arg3: memref<1024x512xbf16, #tpu.memory_space<vmem>>, %arg4: memref<1x1792xf32, #tpu.memory_space<vmem>>, %arg5: memref<8x512xf32, #tpu.memory_space<vmem>>) attributes {dimension_semantics = [], scalar_prefetch = 0 : i64, scratch_operands = 0 : i64, tpu.core_type = #tpu.core_type<tc>} {
    %c0 = arith.constant 0 : index
    %c0_0 = arith.constant 0 : index
    %0 = vector.load %arg0[%c0, %c0_0] : memref<8x128xf32, #tpu.memory_space<vmem>>, vector<8x128xf32>
    %1 = arith.truncf %0 : vector<8x128xf32> to vector<8x128xbf16>
    %c0_1 = arith.constant 0 : index
    %c0_2 = arith.constant 0 : index
    %2 = vector.load %arg1[%c0_1, %c0_2] : memref<128x256xbf16, #tpu.memory_space<vmem>>, vector<128x256xbf16>
    %cst = arith.constant dense<0.000000e+00> : vector<8x256xf32>
    %3 = tpu.matmul %1, %2, %cst {dimension_numbers = #tpu.dot_dimension_numbers<[1], [0], [0], [1], [0, 0, 1, 1], [], []>} : vector<8x128xbf16>, vector<128x256xbf16>, vector<8x256xf32> -> vector<8x256xf32>
    %c0_3 = arith.constant 0 : index
    %c0_4 = arith.constant 0 : index
    %4 = vector.load %arg4[%c0_3, %c0_4] : memref<1x1792xf32, #tpu.memory_space<vmem>>, vector<1x256xf32>
    %5 = vector.broadcast %4 : vector<1x256xf32> to vector<8x256xf32>
    %6 = arith.addf %3, %5 : vector<8x256xf32>
    %cst_5 = arith.constant 0.000000e+00 : f32
    %7 = vector.broadcast %cst_5 : f32 to vector<8x256xf32>
    %8 = arith.subf %7, %6 : vector<8x256xf32>
    %9 = math.exp %8 : vector<8x256xf32>
    %cst_6 = arith.constant 1.000000e+00 : f32
    %10 = vector.broadcast %cst_6 : f32 to vector<8x256xf32>
    %11 = arith.addf %10, %9 : vector<8x256xf32>
    %12 = tpu.reciprocal %11 {approx = true} : vector<8x256xf32> -> vector<8x256xf32>
    %13 = arith.mulf %6, %12 : vector<8x256xf32>
    %14 = arith.truncf %13 : vector<8x256xf32> to vector<8x256xbf16>
    %c0_7 = arith.constant 0 : index
    %c0_8 = arith.constant 0 : index
    %15 = vector.load %arg2[%c0_7, %c0_8] : memref<256x1024xbf16, #tpu.memory_space<vmem>>, vector<256x1024xbf16>
    %cst_9 = arith.constant dense<0.000000e+00> : vector<8x1024xf32>
    %16 = tpu.matmul %14, %15, %cst_9 {dimension_numbers = #tpu.dot_dimension_numbers<[1], [0], [0], [1], [0, 0, 1, 1], [], []>} : vector<8x256xbf16>, vector<256x1024xbf16>, vector<8x1024xf32> -> vector<8x1024xf32>
    %c0_10 = arith.constant 0 : index
    %c256 = arith.constant 256 : index
    %17 = vector.load %arg4[%c0_10, %c256] : memref<1x1792xf32, #tpu.memory_space<vmem>>, vector<1x1024xf32>
    %18 = vector.broadcast %17 : vector<1x1024xf32> to vector<8x1024xf32>
    %19 = arith.addf %16, %18 : vector<8x1024xf32>
    %cst_11 = arith.constant 0.000000e+00 : f32
    %20 = vector.broadcast %cst_11 : f32 to vector<8x1024xf32>
    %21 = arith.subf %20, %19 : vector<8x1024xf32>
    %22 = math.exp %21 : vector<8x1024xf32>
    %cst_12 = arith.constant 1.000000e+00 : f32
    %23 = vector.broadcast %cst_12 : f32 to vector<8x1024xf32>
    %24 = arith.addf %23, %22 : vector<8x1024xf32>
    %25 = tpu.reciprocal %24 {approx = true} : vector<8x1024xf32> -> vector<8x1024xf32>
    %26 = arith.mulf %19, %25 : vector<8x1024xf32>
    %27 = arith.truncf %26 : vector<8x1024xf32> to vector<8x1024xbf16>
    %c0_13 = arith.constant 0 : index
    %c0_14 = arith.constant 0 : index
    %28 = vector.load %arg3[%c0_13, %c0_14] : memref<1024x512xbf16, #tpu.memory_space<vmem>>, vector<1024x512xbf16>
    %cst_15 = arith.constant dense<0.000000e+00> : vector<8x512xf32>
    %29 = tpu.matmul %27, %28, %cst_15 {dimension_numbers = #tpu.dot_dimension_numbers<[1], [0], [0], [1], [0, 0, 1, 1], [], []>} : vector<8x1024xbf16>, vector<1024x512xbf16>, vector<8x512xf32> -> vector<8x512xf32>
    %c0_16 = arith.constant 0 : index
    %c1280 = arith.constant 1280 : index
    %30 = vector.load %arg4[%c0_16, %c1280] : memref<1x1792xf32, #tpu.memory_space<vmem>>, vector<1x512xf32>
    %31 = vector.broadcast %30 : vector<1x512xf32> to vector<8x512xf32>
    %32 = arith.addf %29, %31 : vector<8x512xf32>
    %c0_17 = arith.constant 0 : index
    %c0_18 = arith.constant 0 : index
    %33 = vector.load %arg5[%c0_17, %c0_18] : memref<8x512xf32, #tpu.memory_space<vmem>>, vector<8x512xf32>
    tpu.vector_store %arg5[%c0_17, %c0_18], %32 {strides = array<i32>} : memref<8x512xf32, #tpu.memory_space<vmem>>, vector<8x512xf32>,
    return
  }
}

</mosaic_0001>

<bundles_post_ra>
// kernel: forward.1
= control target key start
LH: loop header
LB: loop body
LE: loop exit
PB: predicated region body
PF: predicated region fallthrough
CT: control target
= control target key end

     0   :  { %v3987_v1 = vmov 0   ;;  %s5318_s1 = inlined_call_operand.vmem [shape: bf16[128,256], index: 1, kind: input, shape index: {}]   ;;  %s5319_s2 = inlined_call_operand.vmem [shape: bf16[256,1024], index: 2, kind: input, shape index: {}]   ;;  %s5320_s0 = inlined_call_operand.vmem [shape: f32[8,128], index: 0, kind: input, shape index: {}]   ;;  %s5321_s3 = inlined_call_operand.vmem [shape: bf16[1024,512], index: 3, kind: input, shape index: {}]   ;;  %s5322_s4 = inlined_call_operand.vmem [shape: f32[1,1792], index: 4, kind: input, shape index: {}]   ;;  %s5323_s5 = inlined_call_operand.vmem [shape: f32[8,512], index: 5, kind: output, shape index: {}]  }
   0x1   :  { %v3539_v0 = vld [vmem:[%s5318_s1 + $0x4] ss:$8 sps:$4 sm:$0xff]   ;;  %163 = vmatprep.mubr.bf16.mxu0 %v3987_v1  ;;  %v3541_v2 = vld [vmem:[%s5318_s1] ss:$8 sps:$4 sm:$0xff]   ;;  %v3542_v3 = vld [vmem:[%s5318_s1 + $0x14] ss:$8 sps:$4 sm:$0xff]  }
   0x2   :  { %131 = vmatprep.subr.bf16.mxu0 %v3539_v0  ;;  %v3544_v4 = vld [vmem:[%s5318_s1 + $0x10] ss:$8 sps:$4 sm:$0xff]   ;;  %v3545_v5 = vld [vmem:[%s5318_s1 + $0x24] ss:$8 sps:$4 sm:$0xff]   ;;  %v3547_v6 = vld [vmem:[%s5318_s1 + $0x20] ss:$8 sps:$4 sm:$0xff]  }
   0x3   :  { %132 = vmatpush1.bf16.msra.mxu0 %v3541_v2  ;;  %v3548_v7 = vld [vmem:[%s5318_s1 + $0x34] ss:$8 sps:$4 sm:$0xff]   ;;  %v3550_v8 = vld [vmem:[%s5318_s1 + $0x30] ss:$8 sps:$4 sm:$0xff]   ;;  %v186_v9 = vld [vmem:[%s5319_s2] sm:$0xff] }
   0x4   :  { %133 = vmatprep.subr.bf16.mxu0 %v3542_v3  ;;  %v190_v10 = vld [vmem:[%s5319_s2 + $0x20] sm:$0xff]  ;;  %v3554_v21 = vld [vmem:[%s5318_s1 + $0x54] ss:$8 sps:$4 sm:$0xff]   ;;  %v3556_v25 = vld [vmem:[%s5318_s1 + $0x50] ss:$8 sps:$4 sm:$0xff]  }
   0x5   :  { %v3551_v11 = vld [vmem:[%s5318_s1 + $0x44] ss:$8 sps:$4 sm:$0xff]   ;;  %v3127_v12 = vcombine.high %v186_v9, %v190_v10  ;;  %v3126_v13 = vcombine.low %v186_v9, %v190_v10  ;;  %v3553_v19 = vld [vmem:[%s5318_s1 + $0x40] ss:$8 sps:$4 sm:$0xff]   ;;  %v3560_v33 = vld [vmem:[%s5318_s1 + $0x74] ss:$8 sps:$4 sm:$0xff]  }
   0x6   :  { %v194_v14 = vld [vmem:[%s5319_s2 + $0x40] sm:$0xff]  ;;  %v187_v34 = vld [vmem:[%s5319_s2 + $0x8] sm:$0xff]  ;;  %v3562_v39 = vld [vmem:[%s5318_s1 + $0x70] ss:$8 sps:$4 sm:$0xff]  }
   0x7   :  { %134 = vmatpush1.bf16.msra.mxu0 %v3544_v4  ;;  %v198_v15 = vld [vmem:[%s5319_s2 + $0x60] sm:$0xff]  ;;  %996 = vmatprep.subr.bf16.mxu1 %v3127_v12  ;;  %v191_v36 = vld [vmem:[%s5319_s2 + $0x28] sm:$0xff] }
   0x8   :  { %135 = vmatprep.subr.bf16.mxu0 %v3545_v5  ;;  %v3135_v16 = vcombine.high %v194_v14, %v198_v15  ;;  %v202_v17 = vld [vmem:[%s5319_s2 + $0x80] sm:$0xff]  ;;  %997 = vmatpush1.bf16.msra.mxu1 %v3126_v13  ;;  %v3134_v20 = vcombine.low %v194_v14, %v198_v15  ;;  %v3129_v42 = vcombine.high %v187_v34, %v191_v36  ;;  %v195_v43 = vld [vmem:[%s5319_s2 + $0x48] sm:$0xff] }
   0x9   :  { %v206_v18 = vld [vmem:[%s5319_s2 + $0xa0] sm:$0xff]  ;;  %v199_v45 = vld [vmem:[%s5319_s2 + $0x68] sm:$0xff]  ;;  %v3128_v49 = vcombine.low %v187_v34, %v191_v36 }
   0xa   :  { %998 = vmatprep.subr.bf16.mxu1 %v3135_v16  ;;  %v3143_v22 = vcombine.high %v202_v17, %v206_v18  ;;  %v210_v23 = vld [vmem:[%s5319_s2 + $0xc0] sm:$0xff]  ;;  %v3142_v26 = vcombine.low %v202_v17, %v206_v18  ;;  %v3137_v51 = vcombine.high %v195_v43, %v199_v45  ;;  %v203_v53 = vld [vmem:[%s5319_s2 + $0x88] sm:$0xff]  ;;  %v3136_v55 = vcombine.low %v195_v43, %v199_v45 }
   0xb   :  { %136 = vmatpush1.bf16.msra.mxu0 %v3547_v6  ;;  %v214_v24 = vld [vmem:[%s5319_s2 + $0xe0] sm:$0xff]  ;;  %v207_v54 = vld [vmem:[%s5319_s2 + $0xa8] sm:$0xff] }
   0xc   :  { %137 = vmatprep.subr.bf16.mxu0 %v3548_v7  ;;  %999 = vmatpush1.bf16.msra.mxu1 %v3134_v20  ;;  %v3557_v27 = vld [vmem:[%s5318_s1 + $0x64] ss:$8 sps:$4 sm:$0xff]   ;;  %v3151_v28 = vcombine.high %v210_v23, %v214_v24  ;;  %v3559_v31 = vld [vmem:[%s5318_s1 + $0x60] ss:$8 sps:$4 sm:$0xff]   ;;  %v3150_v32 = vcombine.low %v210_v23, %v214_v24  ;;  %v3145_v57 = vcombine.high %v203_v53, %v207_v54 }
   0xd   :  { %1000 = vmatprep.subr.bf16.mxu1 %v3143_v22  ;;  %v218_v29 = vld [vmem:[%s5319_s2 + $0x100] sm:$0xff]  ;;  %v211_v58 = vld [vmem:[%s5319_s2 + $0xc8] sm:$0xff]  ;;  %v3144_v60 = vcombine.low %v203_v53, %v207_v54 }
   0xe   :  { %v222_v30 = vld [vmem:[%s5319_s2 + $0x120] sm:$0xff]  ;;  %v215_v59 = vld [vmem:[%s5319_s2 + $0xe8] sm:$0xff] }
   0xf   :  { %138 = vmatpush1.bf16.msra.mxu0 %v3550_v8  ;;  %v3159_v35 = vcombine.high %v218_v29, %v222_v30  ;;  %v226_v37 = vld [vmem:[%s5319_s2 + $0x140] sm:$0xff]  ;;  %v3158_v41 = vcombine.low %v218_v29, %v222_v30  ;;  %v3153_v61 = vcombine.high %v211_v58, %v215_v59  ;;  %v219_v62 = vld [vmem:[%s5319_s2 + $0x108] sm:$0xff]  ;;  %v3152_v0 = vcombine.low %v211_v58, %v215_v59 }
  0x10   :  { %139 = vmatprep.subr.bf16.mxu0 %v3551_v11  ;;  %1001 = vmatpush1.bf16.msra.mxu1 %v3142_v26  ;;  %v230_v38 = vld [vmem:[%s5319_s2 + $0x160] sm:$0xff]  ;;  %v223_v63 = vld [vmem:[%s5319_s2 + $0x128] sm:$0xff] }
  0x11   :  { %1002 = vmatprep.subr.bf16.mxu1 %v3151_v28  ;;  %v21_v40 = vld [vmem:[%s5320_s0] sm:$0xff]  ;;  %v3167_v44 = vcombine.high %v226_v37, %v230_v38  ;;  %v3166_v50 = vcombine.low %v226_v37, %v230_v38  ;;  %v3161_v1 = vcombine.high %v219_v62, %v223_v63  ;;  %v227_v2 = vld [vmem:[%s5319_s2 + $0x148] sm:$0xff]  ;;  %v3160_v4 = vcombine.low %v219_v62, %v223_v63 }
  0x12   :  { %v234_v46 = vld [vmem:[%s5319_s2 + $0x180] sm:$0xff]  ;;  %v22_v48 = vpack.c.bf16 %v21_v40, %v21_v40  ;;  %v231_v3 = vld [vmem:[%s5319_s2 + $0x168] sm:$0xff] }
  0x13   :  { %140 = vmatpush1.bf16.msra.mxu0 %v3553_v19  ;;  %v238_v47 = vld [vmem:[%s5319_s2 + $0x1a0] sm:$0xff]  ;;  %v3169_v5 = vcombine.high %v227_v2, %v231_v3  ;;  %v235_v6 = vld [vmem:[%s5319_s2 + $0x188] sm:$0xff]  ;;  %v3168_v8 = vcombine.low %v227_v2, %v231_v3 }
  0x14   :  { %141 = vmatprep.subr.bf16.mxu0 %v3554_v21  ;;  %1003 = vmatpush1.bf16.msra.mxu1 %v3150_v32  ;;  %v3175_v52 = vcombine.high %v234_v46, %v238_v47  ;;  %v3174_v56 = vcombine.low %v234_v46, %v238_v47  ;;  %v239_v7 = vld [vmem:[%s5319_s2 + $0x1a8] sm:$0xff]  ;;  %v242_v11 = vld [vmem:[%s5319_s2 + $0x1c0] sm:$0xff] }
  0x15   :  { %1004 = vmatprep.subr.bf16.mxu1 %v3159_v35  ;;  %v3177_v9 = vcombine.high %v235_v6, %v239_v7  ;;  %v3176_v10 = vcombine.low %v235_v6, %v239_v7  ;;  %v246_v12 = vld [vmem:[%s5319_s2 + $0x1e0] sm:$0xff]  ;;  %v243_v13 = vld [vmem:[%s5319_s2 + $0x1c8] sm:$0xff] }
  0x16   :  { %v3183_v14 = vcombine.high %v242_v11, %v246_v12  ;;  %v247_v15 = vld [vmem:[%s5319_s2 + $0x1e8] sm:$0xff]  ;;  %v3182_v18 = vcombine.low %v242_v11, %v246_v12  ;;  %v250_v19 = vld [vmem:[%s5319_s2 + $0x200] sm:$0xff] }
  0x17   :  { %142 = vmatpush1.bf16.msra.mxu0 %v3556_v25  ;;  %v3184_v16 = vcombine.low %v243_v13, %v247_v15  ;;  %v3185_v17 = vcombine.high %v243_v13, %v247_v15  ;;  %v254_v20 = vld [vmem:[%s5319_s2 + $0x220] sm:$0xff]  ;;  %v251_v21 = vld [vmem:[%s5319_s2 + $0x208] sm:$0xff] }
  0x18   :  { %143 = vmatprep.subr.bf16.mxu0 %v3557_v27  ;;  %1005 = vmatpush1.bf16.msra.mxu1 %v3158_v41  ;;  %v3191_v22 = vcombine.high %v250_v19, %v254_v20  ;;  %v255_v23 = vld [vmem:[%s5319_s2 + $0x228] sm:$0xff]  ;;  %v3190_v26 = vcombine.low %v250_v19, %v254_v20  ;;  %v258_v27 = vld [vmem:[%s5319_s2 + $0x240] sm:$0xff]  ;;  %v188_v19 = vld [vmem:[%s5319_s2 + $0x10] sm:$0xff] }
  0x19   :  { %1006 = vmatprep.subr.bf16.mxu1 %v3167_v44  ;;  %v3192_v24 = vcombine.low %v251_v21, %v255_v23  ;;  %v3193_v25 = vcombine.high %v251_v21, %v255_v23  ;;  %v262_v28 = vld [vmem:[%s5319_s2 + $0x260] sm:$0xff]  ;;  %v259_v29 = vld [vmem:[%s5319_s2 + $0x248] sm:$0xff]  ;;  %v192_v20 = vld [vmem:[%s5319_s2 + $0x30] sm:$0xff] }
  0x1a   :  { %v3199_v30 = vcombine.high %v258_v27, %v262_v28  ;;  %v3198_v34 = vcombine.low %v258_v27, %v262_v28  ;;  %v266_v35 = vld [vmem:[%s5319_s2 + $0x280] sm:$0xff]  ;;  %v267_v37 = vld [vmem:[%s5319_s2 + $0x288] sm:$0xff]  ;;  %v3131_v21 = vcombine.high %v188_v19, %v192_v20  ;;  %v193_v23 = vld [vmem:[%s5319_s2 + $0x38] sm:$0xff]  ;;  %v41_v27 = vlaneseq }
  0x1b   :  { %144 = vmatpush1.bf16.msra.mxu0 %v3559_v31  ;;  %v263_v31 = vld [vmem:[%s5319_s2 + $0x268] sm:$0xff]  ;;  %v270_v36 = vld [vmem:[%s5319_s2 + $0x2a0] sm:$0xff] }
  0x1c   :  { %145 = vmatprep.subr.bf16.mxu0 %v3560_v33  ;;  %1007 = vmatpush1.bf16.msra.mxu1 %v3166_v50  ;;  %v3200_v32 = vcombine.low %v259_v29, %v263_v31  ;;  %v3201_v33 = vcombine.high %v259_v29, %v263_v31  ;;  %v3207_v38 = vcombine.high %v266_v35, %v270_v36  ;;  %v274_v43 = vld [vmem:[%s5319_s2 + $0x2c0] sm:$0xff]  ;;  %v275_v45 = vld [vmem:[%s5319_s2 + $0x2c8] sm:$0xff]  ;;  %v4273_v28 = vshrl.u32 %v41_v27, 7  ;;  %v240_v27 = vld [vmem:[%s5319_s2 + $0x1b0] sm:$0xff] }
  0x1d   :  { %1008 = vmatprep.subr.bf16.mxu1 %v3175_v52  ;;  %v278_v44 = vld [vmem:[%s5319_s2 + $0x2e0] sm:$0xff]  ;;  %v279_v47 = vld [vmem:[%s5319_s2 + $0x2e8] sm:$0xff] }
  0x1e   :  { %v3215_v46 = vcombine.high %v274_v43, %v278_v44  ;;  %v3214_v50 = vcombine.low %v274_v43, %v278_v44  ;;  %v286_v52 = vld [vmem:[%s5319_s2 + $0x320] sm:$0xff]  ;;  %v283_v53 = vld [vmem:[%s5319_s2 + $0x308] sm:$0xff]  ;;  %v4276_v29 = vsub.s32 0, %v4273_v28  ;;  %v4282_v31 = vsub.s32 1, %v4273_v28 }
  0x1f   :  { %146 = vmatpush1.bf16.msra.mxu0 %v3562_v39  ;;  %v271_v39 = vld [vmem:[%s5319_s2 + $0x2a8] sm:$0xff]  ;;  %v290_v59 = vld [vmem:[%s5319_s2 + $0x340] sm:$0xff] }
  0x20   :  { %1037 = vmatprep.subr.bf16.mxu0 %v3129_v42  ;;  %1009 = vmatpush1.bf16.msra.mxu1 %v3174_v56  ;;  %v3208_v40 = vcombine.low %v267_v37, %v271_v39  ;;  %v3209_v41 = vcombine.high %v267_v37, %v271_v39  ;;  %v3206_v42 = vcombine.low %v266_v35, %v270_v36  ;;  %v295_v63 = vld [vmem:[%s5319_s2 + $0x368] sm:$0xff]  ;;  %v298_v3 = vld [vmem:[%s5319_s2 + $0x380] sm:$0xff] }
  0x21   :  { %1010 = vmatprep.subr.bf16.mxu1 %v3183_v14  ;;  %v303_v7 = vld [vmem:[%s5319_s2 + $0x3a8] sm:$0xff]  ;;  %v306_v11 = vld [vmem:[%s5319_s2 + $0x3c0] sm:$0xff] }
  0x22   :  { %164 = vmatmul.mubr.bf16.vlgmr.msra.gmra.mrb[0].mxu0 %v22_v48  ;;  %v3216_v48 = vcombine.low %v275_v45, %v279_v47  ;;  %v310_v12 = vld [vmem:[%s5319_s2 + $0x3e0] sm:$0xff]  ;;  %v307_v13 = vld [vmem:[%s5319_s2 + $0x3c8] sm:$0xff] }
  0x23   :  { %1038 = vmatpush1.bf16.msra.mxu0 %v3128_v49  ;;  %v3217_v49 = vcombine.high %v275_v45, %v279_v47  ;;  %v3247_v14 = vcombine.high %v306_v11, %v310_v12  ;;  %v311_v15 = vld [vmem:[%s5319_s2 + $0x3e8] sm:$0xff] }
  0x24   :  { %1039 = vmatprep.subr.bf16.mxu0 %v3137_v51  ;;  %1011 = vmatpush1.bf16.msra.mxu1 %v3182_v18  ;;  %v282_v51 = vld [vmem:[%s5319_s2 + $0x300] sm:$0xff]  ;;  %v3246_v18 = vcombine.low %v306_v11, %v310_v12  ;;  %v224_v11 = vld [vmem:[%s5319_s2 + $0x130] sm:$0xff]  ;;  %v221_v12 = vld [vmem:[%s5319_s2 + $0x118] sm:$0xff] }
  0x25   :  { %1012 = vmatprep.subr.bf16.mxu1 %v3191_v22  ;;  %v3223_v54 = vcombine.high %v282_v51, %v286_v52  ;;  %v3222_v58 = vcombine.low %v282_v51, %v286_v52  ;;  %v189_v22 = vld [vmem:[%s5319_s2 + $0x18] sm:$0xff]  ;;  %v196_v51 = vld [vmem:[%s5319_s2 + $0x50] sm:$0xff] }
  0x26   :  { %v200_v52 = vld [vmem:[%s5319_s2 + $0x70] sm:$0xff] }
  0x27   :  { %1040 = vmatpush1.bf16.msra.mxu0 %v3136_v55  ;;  %v287_v55 = vld [vmem:[%s5319_s2 + $0x328] sm:$0xff] }
  0x28   :  { %1041 = vmatprep.subr.bf16.mxu0 %v3145_v57  ;;  %1013 = vmatpush1.bf16.msra.mxu1 %v3190_v26  ;;  %v3224_v56 = vcombine.low %v283_v53, %v287_v55  ;;  %v3225_v57 = vcombine.high %v283_v53, %v287_v55  ;;  %v3133_v26 = vcombine.high %v189_v22, %v193_v23  ;;  %v197_v53 = vld [vmem:[%s5319_s2 + $0x58] sm:$0xff] }
  0x29   :  { %1014 = vmatprep.subr.bf16.mxu1 %v3199_v30  ;;  %v39_v30 = vld [vmem:[%s5322_s4] sm:$0x3] }
  0x2b   :  { %1042 = vmatpush1.bf16.msra.mxu0 %v3144_v60  ;;  %v294_v60 = vld [vmem:[%s5319_s2 + $0x360] sm:$0xff] }
  0x2c   :  { %1043 = vmatprep.subr.bf16.mxu0 %v3153_v61  ;;  %1015 = vmatpush1.bf16.msra.mxu1 %v3198_v34  ;;  %v291_v61 = vld [vmem:[%s5319_s2 + $0x348] sm:$0xff]  ;;  %v3231_v62 = vcombine.high %v290_v59, %v294_v60  ;;  %v3230_v2 = vcombine.low %v290_v59, %v294_v60  ;;  %v205_v59 = vld [vmem:[%s5319_s2 + $0x98] sm:$0xff] }
  0x2d   :  { %1016 = vmatprep.subr.bf16.mxu1 %v3207_v38  ;;  %v209_v60 = vld [vmem:[%s5319_s2 + $0xb8] sm:$0xff] }
  0x2f   :  { %1044 = vmatpush1.bf16.msra.mxu0 %v3152_v0  ;;  %v3232_v0 = vcombine.low %v291_v61, %v295_v63 }
  0x30   :  { %1045 = vmatprep.subr.bf16.mxu0 %v3161_v1  ;;  %1017 = vmatpush1.bf16.msra.mxu1 %v3206_v42  ;;  %v3233_v1 = vcombine.high %v291_v61, %v295_v63 }
  0x31   :  { %1018 = vmatprep.subr.bf16.mxu1 %v3215_v46 }
  0x33   :  { %1046 = vmatpush1.bf16.msra.mxu0 %v3160_v4  ;;  %v302_v4 = vld [vmem:[%s5319_s2 + $0x3a0] sm:$0xff] }
  0x34   :  { %1047 = vmatprep.subr.bf16.mxu0 %v3169_v5  ;;  %1019 = vmatpush1.bf16.msra.mxu1 %v3214_v50  ;;  %v299_v5 = vld [vmem:[%s5319_s2 + $0x388] sm:$0xff]  ;;  %v3239_v6 = vcombine.high %v298_v3, %v302_v4 }
  0x35   :  { %1020 = vmatprep.subr.bf16.mxu1 %v3223_v54  ;;  %v201_v54 = vld [vmem:[%s5319_s2 + $0x78] sm:$0xff] }
  0x36   :  { %v3141_v63 = vcombine.high %v197_v53, %v201_v54 }
  0x37   :  { %1048 = vmatpush1.bf16.msra.mxu0 %v3168_v8  ;;  %v3240_v8 = vcombine.low %v299_v5, %v303_v7 }
  0x38   :  { %1049 = vmatprep.subr.bf16.mxu0 %v3177_v9  ;;  %1021 = vmatpush1.bf16.msra.mxu1 %v3222_v58  ;;  %v3241_v9 = vcombine.high %v299_v5, %v303_v7  ;;  %v208_v58 = vld [vmem:[%s5319_s2 + $0xb0] sm:$0xff]  ;;  %v217_v5 = vld [vmem:[%s5319_s2 + $0xf8] sm:$0xff]  ;;  %v3149_v7 = vcombine.high %v205_v59, %v209_v60 }
  0x39   :  { %1022 = vmatprep.subr.bf16.mxu1 %v3231_v62  ;;  %v3139_v62 = vcombine.high %v196_v51, %v200_v52 }
  0x3b   :  { %1050 = vmatpush1.bf16.msra.mxu0 %v3176_v10  ;;  %v3238_v10 = vcombine.low %v298_v3, %v302_v4  ;;  %v216_v3 = vld [vmem:[%s5319_s2 + $0xf0] sm:$0xff]  ;;  %v213_v4 = vld [vmem:[%s5319_s2 + $0xd8] sm:$0xff] }
  0x3c   :  { %1051 = vmatprep.subr.bf16.mxu0 %v3185_v17  ;;  %1023 = vmatpush1.bf16.msra.mxu1 %v3230_v2  ;;  %v3249_v17 = vcombine.high %v307_v13, %v311_v15  ;;  %v212_v2 = vld [vmem:[%s5319_s2 + $0xd0] sm:$0xff] }
  0x3d   :  { %1024 = vmatprep.subr.bf16.mxu1 %v3239_v6 }
  0x3f   :  { %1052 = vmatpush1.bf16.msra.mxu0 %v3184_v16  ;;  %v3248_v16 = vcombine.low %v307_v13, %v311_v15  ;;  %v225_v13 = vld [vmem:[%s5319_s2 + $0x138] sm:$0xff]  ;;  %v3157_v15 = vcombine.high %v213_v4, %v217_v5 }
  0x40   :  { %1053 = vmatprep.subr.bf16.mxu0 %v3193_v25  ;;  %1025 = vmatpush1.bf16.msra.mxu1 %v3238_v10  ;;  %v3132_v25 = vcombine.low %v189_v22, %v193_v23  ;;  %v220_v10 = vld [vmem:[%s5319_s2 + $0x110] sm:$0xff]  ;;  %v3165_v23 = vcombine.high %v221_v12, %v225_v13 }
  0x41   :  { %1026 = vmatprep.subr.bf16.mxu1 %v3247_v14  ;;  %v3155_v14 = vcombine.high %v212_v2, %v216_v3  ;;  %v3163_v22 = vcombine.high %v220_v10, %v224_v11 }
  0x43   :  { %1054 = vmatpush1.bf16.msra.mxu0 %v3192_v24  ;;  %v3130_v24 = vcombine.low %v188_v19, %v192_v20  ;;  %v232_v19 = vld [vmem:[%s5319_s2 + $0x170] sm:$0xff]  ;;  %v229_v20 = vld [vmem:[%s5319_s2 + $0x158] sm:$0xff] }
  0x44   :  { %1055 = vmatprep.subr.bf16.mxu0 %v3201_v33  ;;  %1027 = vmatpush1.bf16.msra.mxu1 %v3246_v18  ;;  %v48_v33 = vrot.slane %v39_v30, %v4282_v31  ;;  %v228_v18 = vld [vmem:[%s5319_s2 + $0x150] sm:$0xff] }
  0x45   :  { %1078 = vmatprep.subr.bf16.mxu1 %v3131_v21  ;;  %v233_v21 = vld [vmem:[%s5319_s2 + $0x178] sm:$0xff] }
  0x47   :  { %1056 = vmatpush1.bf16.msra.mxu0 %v3200_v32  ;;  %v44_v32 = vrot.slane %v39_v30, %v4276_v29  ;;  %v237_v30 = vld [vmem:[%s5319_s2 + $0x198] sm:$0xff] }
  0x48   :  { %1057 = vmatprep.subr.bf16.mxu0 %v3209_v41 }
  0x4b   :  { %1058 = vmatpush1.bf16.msra.mxu0 %v3208_v40 }
  0x4c   :  { %1059 = vmatprep.subr.bf16.mxu0 %v3217_v49 }
  0x4f   :  { %1060 = vmatpush1.bf16.msra.mxu0 %v3216_v48 }
  0x50   :  { %1061 = vmatprep.subr.bf16.mxu0 %v3225_v57  ;;  %v204_v57 = vld [vmem:[%s5319_s2 + $0x90] sm:$0xff] }
  0x51   :  { %v3147_v6 = vcombine.high %v204_v57, %v208_v58 }
  0x53   :  { %1062 = vmatpush1.bf16.msra.mxu0 %v3224_v56 }
  0x54   :  { %1063 = vmatprep.subr.bf16.mxu0 %v3233_v1  ;;  %v3140_v1 = vcombine.low %v197_v53, %v201_v54  ;;  %v260_v53 = vld [vmem:[%s5319_s2 + $0x250] sm:$0xff] }
  0x55   :  { %v264_v54 = vld [vmem:[%s5319_s2 + $0x270] sm:$0xff] }
  0x57   :  { %1064 = vmatpush1.bf16.msra.mxu0 %v3232_v0  ;;  %v3138_v0 = vcombine.low %v196_v51, %v200_v52 }
  0x58   :  { %1065 = vmatprep.subr.bf16.mxu0 %v3241_v9  ;;  %v3148_v9 = vcombine.low %v205_v59, %v209_v60 }
  0x5b   :  { %1066 = vmatpush1.bf16.msra.mxu0 %v3240_v8  ;;  %v3146_v8 = vcombine.low %v204_v57, %v208_v58 }
  0x5c   :  { %1067 = vmatprep.subr.bf16.mxu0 %v3249_v17  ;;  %v3156_v17 = vcombine.low %v213_v4, %v217_v5  ;;  %v3202_v4 = vcombine.low %v260_v53, %v264_v54 }
  0x5f   :  { %1068 = vmatpush1.bf16.msra.mxu0 %v3248_v16  ;;  %v3154_v16 = vcombine.low %v212_v2, %v216_v3  ;;  %v273_v3 = vld [vmem:[%s5319_s2 + $0x2b8] sm:$0xff] }
  0x60   :  { %1119 = vmatprep.subr.bf16.mxu0 %v3133_v26  ;;  %v236_v26 = vld [vmem:[%s5319_s2 + $0x190] sm:$0xff] }
  0xf5   :  { %v165_v34 = vpop.f32.mrb[0].mxu0 }
  0xf6   :  { %v166_v35 = vadd.f32 %v165_v34, %v44_v32  ;;  %v167_v36 = vpop.f32.mrb[1].mxu0  ;;  %v241_v32 = vld [vmem:[%s5319_s2 + $0x1b8] sm:$0xff]  ;;  %v3173_v34 = vcombine.high %v229_v20, %v233_v21 }
  0xf7   :  { %v168_v37 = vadd.f32 %v167_v36, %v48_v33  ;;  %v169_v38 = vpop.f32.mrb[2].mxu0  ;;  %v3171_v33 = vcombine.high %v228_v18, %v232_v19  ;;  %v3172_v36 = vcombine.low %v229_v20, %v233_v21 }
  0xf8   :  { %v172_v39 = vsub.f32 0.0, %v166_v35  ;;  %v170_v40 = vpop.f32.mrb[3].mxu0  ;;  %v248_v38 = vld [vmem:[%s5319_s2 + $0x1f0] sm:$0xff] }
  0xf9   :  { %v173_v41 = vsub.f32 0.0, %v168_v37  ;;  %v249_v40 = vld [vmem:[%s5319_s2 + $0x1f8] sm:$0xff] }
  0xfa   :  { %v174_v42 = vmul.f32 1.442695, %v172_v39  ;;  %v245_v39 = vld [vmem:[%s5319_s2 + $0x1d8] sm:$0xff] }
  0xfb   :  { %v176_v43 = vmul.f32 1.442695, %v173_v41  ;;  %v3179_v41 = vcombine.high %v236_v26, %v240_v27  ;;  %v3188_v52 = vcombine.low %v245_v39, %v249_v40 }
  0xfc   :  { %3947 = vpow2.f32 %v174_v42  ;;  %v3181_v42 = vcombine.high %v237_v30, %v241_v32 }
  0xfd   :  { %3949 = vpow2.f32 %v176_v43  ;;  %v3178_v43 = vcombine.low %v236_v26, %v240_v27  ;;  %v293_v26 = vld [vmem:[%s5319_s2 + $0x358] sm:$0xff] }
  0xfe   :  { %v297_v27 = vld [vmem:[%s5319_s2 + $0x378] sm:$0xff] }
 0x106   :  { %v3948_v44 = vpop.eup %3947 }
 0x107   :  { %v3950_v45 = vpop.eup %3949  ;;  %v178_v46 = vadd.f32 1.0, %v3948_v44  ;;  %v3180_v44 = vcombine.low %v237_v30, %v241_v32 }
 0x108   :  { %v179_v47 = vadd.f32 1.0, %v3950_v45  ;;  %v252_v45 = vld [vmem:[%s5319_s2 + $0x210] sm:$0xff] }
 0x109   :  { %3951 = vrcp.f32 %v178_v46  ;;  %v256_v46 = vld [vmem:[%s5319_s2 + $0x230] sm:$0xff] }
 0x10a   :  { %3953 = vrcp.f32 %v179_v47  ;;  %v253_v47 = vld [vmem:[%s5319_s2 + $0x218] sm:$0xff]  ;;  %v3195_v57 = vcombine.high %v252_v45, %v256_v46  ;;  %v3194_v59 = vcombine.low %v252_v45, %v256_v46 }
 0x10b   :  { %v309_v45 = vld [vmem:[%s5319_s2 + $0x3d8] sm:$0xff] }
 0x10c   :  { %v313_v46 = vld [vmem:[%s5319_s2 + $0x3f8] sm:$0xff] }
 0x113   :  { %v3952_v48 = vpop.eup %3951 }
 0x114   :  { %v3954_v49 = vpop.eup %3953  ;;  %v182_v50 = vmul.f32 %v3952_v48, %v166_v35  ;;  %v3170_v35 = vcombine.low %v228_v18, %v232_v19  ;;  %v257_v48 = vld [vmem:[%s5319_s2 + $0x238] sm:$0xff] }
 0x115   :  { %v183_v55 = vmul.f32 %v3954_v49, %v168_v37  ;;  %v244_v37 = vld [vmem:[%s5319_s2 + $0x1d0] sm:$0xff]  ;;  %v3197_v58 = vcombine.high %v253_v47, %v257_v48  ;;  %v3196_v60 = vcombine.low %v253_v47, %v257_v48  ;;  %v285_v18 = vld [vmem:[%s5319_s2 + $0x318] sm:$0xff] }
 0x116   :  { %v4310_v61 = vpack.c.bf16 %v182_v50, %v182_v50  ;;  %v3187_v49 = vcombine.high %v244_v37, %v248_v38  ;;  %v3189_v50 = vcombine.high %v245_v39, %v249_v40  ;;  %v3186_v51 = vcombine.low %v244_v37, %v248_v38  ;;  %v289_v19 = vld [vmem:[%s5319_s2 + $0x338] sm:$0xff] }
 0x117   :  { %v185_v56 = vpack.c.bf16 %v183_v55, %v183_v55  ;;  %v261_v55 = vld [vmem:[%s5319_s2 + $0x258] sm:$0xff]  ;;  %v3228_v32 = vcombine.low %v285_v18, %v289_v19  ;;  %v3236_v40 = vcombine.low %v293_v26, %v297_v27 }
 0x118   :  { %v301_v37 = vld [vmem:[%s5319_s2 + $0x398] sm:$0xff] }
 0x119   :  { %1028 = vmatprep.mubr.bf16.mxu1 %v185_v56  ;;  %1069 = vmatprep.mubr.bf16.mxu0 %v185_v56  ;;  %v305_v38 = vld [vmem:[%s5319_s2 + $0x3b8] sm:$0xff] }
 0x11a   :  { %1029 = vmatmul.mubr.bf16.vlgmr.msra.gmra.mrb[0].mxu1 %v4310_v61  ;;  %1070 = vmatmul.mubr.bf16.vlgmr.msra.gmra.mrb[4].mxu0 %v4310_v61  ;;  %v3244_v48 = vcombine.low %v301_v37, %v305_v38 }
 0x11b   :  { %1079 = vmatpush1.bf16.msra.mxu1 %v3130_v24  ;;  %1120 = vmatpush1.bf16.msra.mxu0 %v3132_v25  ;;  %v3162_v24 = vcombine.low %v220_v10, %v224_v11  ;;  %v3164_v25 = vcombine.low %v221_v12, %v225_v13  ;;  %v277_v10 = vld [vmem:[%s5319_s2 + $0x2d8] sm:$0xff] }
 0x11c   :  { %1110 = vmatprep.mubr.bf16.mxu1 %v185_v56  ;;  %1151 = vmatprep.mubr.bf16.mxu0 %v185_v56  ;;  %v265_v56 = vld [vmem:[%s5319_s2 + $0x278] sm:$0xff] }
 0x11d   :  { %1080 = vmatprep.subr.bf16.mxu1 %v3139_v62  ;;  %1121 = vmatprep.subr.bf16.mxu0 %v3141_v63  ;;  %v268_v62 = vld [vmem:[%s5319_s2 + $0x290] sm:$0xff]  ;;  %v3205_v2 = vcombine.high %v261_v55, %v265_v56  ;;  %v3204_v5 = vcombine.low %v261_v55, %v265_v56  ;;  %v281_v11 = vld [vmem:[%s5319_s2 + $0x2f8] sm:$0xff] }
 0x11e   :  { %v272_v63 = vld [vmem:[%s5319_s2 + $0x2b0] sm:$0xff]  ;;  %v3220_v21 = vcombine.low %v277_v10, %v281_v11  ;;  %v3566_v56 = vld [vmem:[%s5321_s3 + $0x8] ss:$16 sps:$4 sm:$0xff]  }
 0x11f   :  { %1081 = vmatpush1.bf16.msra.mxu1 %v3138_v0  ;;  %1122 = vmatpush1.bf16.msra.mxu0 %v3140_v1  ;;  %v269_v0 = vld [vmem:[%s5319_s2 + $0x298] sm:$0xff]  ;;  %v3203_v1 = vcombine.high %v260_v53, %v264_v54  ;;  %v3210_v12 = vcombine.low %v268_v62, %v272_v63  ;;  %v3565_v53 = vld [vmem:[%s5321_s3 + $0x4] ss:$16 sps:$4 sm:$0xff]   ;;  %v3563_v55 = vld [vmem:[%s5321_s3] ss:$16 sps:$4 sm:$0xff]  }
 0x120   :  { %1082 = vmatprep.subr.bf16.mxu1 %v3147_v6  ;;  %1123 = vmatprep.subr.bf16.mxu0 %v3149_v7  ;;  %v3211_v6 = vcombine.high %v268_v62, %v272_v63  ;;  %v3213_v7 = vcombine.high %v269_v0, %v273_v3  ;;  %v3212_v13 = vcombine.low %v269_v0, %v273_v3  ;;  %v3568_v54 = vld [vmem:[%s5321_s3 + $0xc] ss:$16 sps:$4 sm:$0xff]   ;;  %v3577_v62 = vld [vmem:[%s5321_s3 + $0x44] ss:$16 sps:$4 sm:$0xff]   ;;  %v3575_v63 = vld [vmem:[%s5321_s3 + $0x40] ss:$16 sps:$4 sm:$0xff]  }
 0x121   :  { %v3578_v0 = vld [vmem:[%s5321_s3 + $0x48] ss:$16 sps:$4 sm:$0xff]   ;;  %v3581_v3 = vld [vmem:[%s5321_s3 + $0x60] ss:$16 sps:$4 sm:$0xff]  }
 0x123   :  { %1083 = vmatpush1.bf16.msra.mxu1 %v3146_v8  ;;  %1124 = vmatpush1.bf16.msra.mxu0 %v3148_v9  ;;  %v276_v8 = vld [vmem:[%s5319_s2 + $0x2d0] sm:$0xff] }
 0x124   :  { %1084 = vmatprep.subr.bf16.mxu1 %v3155_v14  ;;  %1125 = vmatprep.subr.bf16.mxu0 %v3157_v15  ;;  %v280_v9 = vld [vmem:[%s5319_s2 + $0x2f0] sm:$0xff]  ;;  %v3221_v15 = vcombine.high %v277_v10, %v281_v11  ;;  %v3598_v10 = vld [vmem:[%s5321_s3 + $0xac] ss:$16 sps:$4 sm:$0xff]  }
 0x125   :  { %v3219_v14 = vcombine.high %v276_v8, %v280_v9  ;;  %v3218_v20 = vcombine.low %v276_v8, %v280_v9  ;;  %v3590_v8 = vld [vmem:[%s5321_s3 + $0x88] ss:$16 sps:$4 sm:$0xff]   ;;  %v3595_v9 = vld [vmem:[%s5321_s3 + $0xa4] ss:$16 sps:$4 sm:$0xff]   ;;  %v3593_v11 = vld [vmem:[%s5321_s3 + $0xa0] ss:$16 sps:$4 sm:$0xff]  }
 0x127   :  { %1085 = vmatpush1.bf16.msra.mxu1 %v3154_v16  ;;  %1126 = vmatpush1.bf16.msra.mxu0 %v3156_v17  ;;  %v284_v16 = vld [vmem:[%s5319_s2 + $0x310] sm:$0xff] }
 0x128   :  { %1086 = vmatprep.subr.bf16.mxu1 %v3163_v22  ;;  %1127 = vmatprep.subr.bf16.mxu0 %v3165_v23  ;;  %v288_v17 = vld [vmem:[%s5319_s2 + $0x330] sm:$0xff]  ;;  %v3229_v23 = vcombine.high %v285_v18, %v289_v19  ;;  %v3610_v18 = vld [vmem:[%s5321_s3 + $0xec] ss:$16 sps:$4 sm:$0xff]  }
 0x129   :  { %v3227_v22 = vcombine.high %v284_v16, %v288_v17  ;;  %v3226_v30 = vcombine.low %v284_v16, %v288_v17  ;;  %v3602_v16 = vld [vmem:[%s5321_s3 + $0xc8] ss:$16 sps:$4 sm:$0xff]   ;;  %v3607_v17 = vld [vmem:[%s5321_s3 + $0xe4] ss:$16 sps:$4 sm:$0xff]   ;;  %v3605_v19 = vld [vmem:[%s5321_s3 + $0xe0] ss:$16 sps:$4 sm:$0xff]  }
 0x12b   :  { %1087 = vmatpush1.bf16.msra.mxu1 %v3162_v24  ;;  %1128 = vmatpush1.bf16.msra.mxu0 %v3164_v25  ;;  %v292_v24 = vld [vmem:[%s5319_s2 + $0x350] sm:$0xff] }
 0x12c   :  { %1088 = vmatprep.subr.bf16.mxu1 %v3171_v33  ;;  %1129 = vmatprep.subr.bf16.mxu0 %v3173_v34  ;;  %v296_v25 = vld [vmem:[%s5319_s2 + $0x370] sm:$0xff]  ;;  %v3237_v34 = vcombine.high %v293_v26, %v297_v27  ;;  %v3622_v26 = vld [vmem:[%s5321_s3 + $0x12c] ss:$16 sps:$4 sm:$0xff]  }
 0x12d   :  { %v3235_v33 = vcombine.high %v292_v24, %v296_v25  ;;  %v3234_v39 = vcombine.low %v292_v24, %v296_v25  ;;  %v3614_v24 = vld [vmem:[%s5321_s3 + $0x108] ss:$16 sps:$4 sm:$0xff]   ;;  %v3619_v25 = vld [vmem:[%s5321_s3 + $0x124] ss:$16 sps:$4 sm:$0xff]   ;;  %v3617_v27 = vld [vmem:[%s5321_s3 + $0x120] ss:$16 sps:$4 sm:$0xff]  }
 0x12f   :  { %1089 = vmatpush1.bf16.msra.mxu1 %v3170_v35  ;;  %1130 = vmatpush1.bf16.msra.mxu0 %v3172_v36  ;;  %v300_v35 = vld [vmem:[%s5319_s2 + $0x390] sm:$0xff] }
 0x130   :  { %1090 = vmatprep.subr.bf16.mxu1 %v3179_v41  ;;  %1131 = vmatprep.subr.bf16.mxu0 %v3181_v42  ;;  %v304_v36 = vld [vmem:[%s5319_s2 + $0x3b0] sm:$0xff]  ;;  %v3245_v42 = vcombine.high %v301_v37, %v305_v38  ;;  %v3634_v37 = vld [vmem:[%s5321_s3 + $0x16c] ss:$16 sps:$4 sm:$0xff]  }
 0x131   :  { %v3243_v41 = vcombine.high %v300_v35, %v304_v36  ;;  %v3242_v47 = vcombine.low %v300_v35, %v304_v36  ;;  %v3626_v35 = vld [vmem:[%s5321_s3 + $0x148] ss:$16 sps:$4 sm:$0xff]   ;;  %v3631_v36 = vld [vmem:[%s5321_s3 + $0x164] ss:$16 sps:$4 sm:$0xff]   ;;  %v3629_v38 = vld [vmem:[%s5321_s3 + $0x160] ss:$16 sps:$4 sm:$0xff]  }
 0x133   :  { %1091 = vmatpush1.bf16.msra.mxu1 %v3178_v43  ;;  %1132 = vmatpush1.bf16.msra.mxu0 %v3180_v44  ;;  %v308_v43 = vld [vmem:[%s5319_s2 + $0x3d0] sm:$0xff] }
 0x134   :  { %1092 = vmatprep.subr.bf16.mxu1 %v3187_v49  ;;  %1133 = vmatprep.subr.bf16.mxu0 %v3189_v50  ;;  %v312_v44 = vld [vmem:[%s5319_s2 + $0x3f0] sm:$0xff]  ;;  %v3253_v50 = vcombine.high %v309_v45, %v313_v46 }
 0x135   :  { %v3251_v49 = vcombine.high %v308_v43, %v312_v44 }
 0x137   :  { %1093 = vmatpush1.bf16.msra.mxu1 %v3186_v51  ;;  %1134 = vmatpush1.bf16.msra.mxu0 %v3188_v52  ;;  %v3250_v51 = vcombine.low %v308_v43, %v312_v44  ;;  %v3252_v52 = vcombine.low %v309_v45, %v313_v46  ;;  %v3638_v43 = vld [vmem:[%s5321_s3 + $0x188] ss:$16 sps:$4 sm:$0xff]   ;;  %v3643_v44 = vld [vmem:[%s5321_s3 + $0x1a4] ss:$16 sps:$4 sm:$0xff]   ;;  %v3646_v45 = vld [vmem:[%s5321_s3 + $0x1ac] ss:$16 sps:$4 sm:$0xff]  }
 0x138   :  { %1094 = vmatprep.subr.bf16.mxu1 %v3195_v57  ;;  %1135 = vmatprep.subr.bf16.mxu0 %v3197_v58  ;;  %v3571_v57 = vld [vmem:[%s5321_s3 + $0x24] ss:$16 sps:$4 sm:$0xff]   ;;  %v3574_v58 = vld [vmem:[%s5321_s3 + $0x2c] ss:$16 sps:$4 sm:$0xff]   ;;  %v3641_v46 = vld [vmem:[%s5321_s3 + $0x1a0] ss:$16 sps:$4 sm:$0xff]  }
 0x13b   :  { %1095 = vmatpush1.bf16.msra.mxu1 %v3194_v59  ;;  %1136 = vmatpush1.bf16.msra.mxu0 %v3196_v60  ;;  %v3569_v59 = vld [vmem:[%s5321_s3 + $0x20] ss:$16 sps:$4 sm:$0xff]   ;;  %v3572_v60 = vld [vmem:[%s5321_s3 + $0x28] ss:$16 sps:$4 sm:$0xff]  }
 0x13c   :  { %1096 = vmatprep.subr.bf16.mxu1 %v3203_v1  ;;  %1137 = vmatprep.subr.bf16.mxu0 %v3205_v2  ;;  %v3583_v1 = vld [vmem:[%s5321_s3 + $0x64] ss:$16 sps:$4 sm:$0xff]   ;;  %v3586_v2 = vld [vmem:[%s5321_s3 + $0x6c] ss:$16 sps:$4 sm:$0xff]  }
 0x13f   :  { %1097 = vmatpush1.bf16.msra.mxu1 %v3202_v4  ;;  %1138 = vmatpush1.bf16.msra.mxu0 %v3204_v5  ;;  %v3584_v4 = vld [vmem:[%s5321_s3 + $0x68] ss:$16 sps:$4 sm:$0xff]   ;;  %v3589_v5 = vld [vmem:[%s5321_s3 + $0x84] ss:$16 sps:$4 sm:$0xff]  }
 0x140   :  { %1098 = vmatprep.subr.bf16.mxu1 %v3211_v6  ;;  %1139 = vmatprep.subr.bf16.mxu0 %v3213_v7  ;;  %v3592_v6 = vld [vmem:[%s5321_s3 + $0x8c] ss:$16 sps:$4 sm:$0xff]   ;;  %v3587_v7 = vld [vmem:[%s5321_s3 + $0x80] ss:$16 sps:$4 sm:$0xff]  }
 0x143   :  { %1099 = vmatpush1.bf16.msra.mxu1 %v3210_v12  ;;  %1140 = vmatpush1.bf16.msra.mxu0 %v3212_v13  ;;  %v3596_v12 = vld [vmem:[%s5321_s3 + $0xa8] ss:$16 sps:$4 sm:$0xff]   ;;  %v3601_v13 = vld [vmem:[%s5321_s3 + $0xc4] ss:$16 sps:$4 sm:$0xff]  }
 0x144   :  { %1100 = vmatprep.subr.bf16.mxu1 %v3219_v14  ;;  %1141 = vmatprep.subr.bf16.mxu0 %v3221_v15  ;;  %v3604_v14 = vld [vmem:[%s5321_s3 + $0xcc] ss:$16 sps:$4 sm:$0xff]   ;;  %v3599_v15 = vld [vmem:[%s5321_s3 + $0xc0] ss:$16 sps:$4 sm:$0xff]  }
 0x147   :  { %1101 = vmatpush1.bf16.msra.mxu1 %v3218_v20  ;;  %1142 = vmatpush1.bf16.msra.mxu0 %v3220_v21  ;;  %v3608_v20 = vld [vmem:[%s5321_s3 + $0xe8] ss:$16 sps:$4 sm:$0xff]   ;;  %v3613_v21 = vld [vmem:[%s5321_s3 + $0x104] ss:$16 sps:$4 sm:$0xff]  }
 0x148   :  { %1102 = vmatprep.subr.bf16.mxu1 %v3227_v22  ;;  %1143 = vmatprep.subr.bf16.mxu0 %v3229_v23  ;;  %v3616_v22 = vld [vmem:[%s5321_s3 + $0x10c] ss:$16 sps:$4 sm:$0xff]   ;;  %v3611_v23 = vld [vmem:[%s5321_s3 + $0x100] ss:$16 sps:$4 sm:$0xff]  }
 0x14b   :  { %1103 = vmatpush1.bf16.msra.mxu1 %v3226_v30  ;;  %1144 = vmatpush1.bf16.msra.mxu0 %v3228_v32  ;;  %v3620_v30 = vld [vmem:[%s5321_s3 + $0x128] ss:$16 sps:$4 sm:$0xff]   ;;  %v3625_v32 = vld [vmem:[%s5321_s3 + $0x144] ss:$16 sps:$4 sm:$0xff]  }
 0x14c   :  { %1104 = vmatprep.subr.bf16.mxu1 %v3235_v33  ;;  %1145 = vmatprep.subr.bf16.mxu0 %v3237_v34  ;;  %v3628_v33 = vld [vmem:[%s5321_s3 + $0x14c] ss:$16 sps:$4 sm:$0xff]   ;;  %v3623_v34 = vld [vmem:[%s5321_s3 + $0x140] ss:$16 sps:$4 sm:$0xff]  }
 0x14f   :  { %1105 = vmatpush1.bf16.msra.mxu1 %v3234_v39  ;;  %1146 = vmatpush1.bf16.msra.mxu0 %v3236_v40  ;;  %v3632_v39 = vld [vmem:[%s5321_s3 + $0x168] ss:$16 sps:$4 sm:$0xff]   ;;  %v3637_v40 = vld [vmem:[%s5321_s3 + $0x184] ss:$16 sps:$4 sm:$0xff]  }
 0x150   :  { %1106 = vmatprep.subr.bf16.mxu1 %v3243_v41  ;;  %1147 = vmatprep.subr.bf16.mxu0 %v3245_v42  ;;  %v3640_v41 = vld [vmem:[%s5321_s3 + $0x18c] ss:$16 sps:$4 sm:$0xff]   ;;  %v3635_v42 = vld [vmem:[%s5321_s3 + $0x180] ss:$16 sps:$4 sm:$0xff]  }
 0x153   :  { %1107 = vmatpush1.bf16.msra.mxu1 %v3242_v47  ;;  %1148 = vmatpush1.bf16.msra.mxu0 %v3244_v48  ;;  %v3644_v47 = vld [vmem:[%s5321_s3 + $0x1a8] ss:$16 sps:$4 sm:$0xff]   ;;  %v3649_v48 = vld [vmem:[%s5321_s3 + $0x1c4] ss:$16 sps:$4 sm:$0xff]  }
 0x154   :  { %1108 = vmatprep.subr.bf16.mxu1 %v3251_v49  ;;  %1149 = vmatprep.subr.bf16.mxu0 %v3253_v50  ;;  %v3652_v49 = vld [vmem:[%s5321_s3 + $0x1cc] ss:$16 sps:$4 sm:$0xff]   ;;  %v3647_v50 = vld [vmem:[%s5321_s3 + $0x1c0] ss:$16 sps:$4 sm:$0xff]  }
 0x157   :  { %1109 = vmatpush1.bf16.msra.mxu1 %v3250_v51  ;;  %1150 = vmatpush1.bf16.msra.mxu0 %v3252_v52  ;;  %v3650_v51 = vld [vmem:[%s5321_s3 + $0x1c8] ss:$16 sps:$4 sm:$0xff]   ;;  %v3655_v52 = vld [vmem:[%s5321_s3 + $0x1e4] ss:$16 sps:$4 sm:$0xff]  }
 0x158   :  { %2774 = vmatprep.subr.bf16.mxu1 %v3565_v53  ;;  %2938 = vmatprep.subr.bf16.mxu0 %v3568_v54  ;;  %v3658_v53 = vld [vmem:[%s5321_s3 + $0x1ec] ss:$16 sps:$4 sm:$0xff]   ;;  %v3653_v54 = vld [vmem:[%s5321_s3 + $0x1e0] ss:$16 sps:$4 sm:$0xff]  }
 0x15a   :  { %1111 = vmatmul.mubr.bf16.vlgmr.msra.gmra.mrb[4].mxu1 %v4310_v61  ;;  %1152 = vmatmul.mubr.bf16.vlgmr.msra.gmra.mrb[8].mxu0 %v4310_v61  ;;  %v3580_v61 = vld [vmem:[%s5321_s3 + $0x4c] ss:$16 sps:$4 sm:$0xff]  }
 0x15b   :  { %2775 = vmatpush1.bf16.msra.mxu1 %v3563_v55  ;;  %2939 = vmatpush1.bf16.msra.mxu0 %v3566_v56  ;;  %v3656_v55 = vld [vmem:[%s5321_s3 + $0x1e8] ss:$16 sps:$4 sm:$0xff]   ;;  %v3661_v56 = vld [vmem:[%s5321_s3 + $0x204] ss:$16 sps:$4 sm:$0xff]  }
 0x15c   :  { %2776 = vmatprep.subr.bf16.mxu1 %v3571_v57  ;;  %2940 = vmatprep.subr.bf16.mxu0 %v3574_v58  ;;  %v3664_v57 = vld [vmem:[%s5321_s3 + $0x20c] ss:$16 sps:$4 sm:$0xff]   ;;  %v4673_v58 = vld [vmem:[%s5322_s4 + $0x2] sm:$0xff] }
 0x15f   :  { %2777 = vmatpush1.bf16.msra.mxu1 %v3569_v59  ;;  %2941 = vmatpush1.bf16.msra.mxu0 %v3572_v60  ;;  %v330_v59 = vsub.s32 3, %v4273_v28  ;;  %v319_v60 = vrot.slane %v4673_v58, %v4276_v29 }
 0x160   :  { %2778 = vmatprep.subr.bf16.mxu1 %v3577_v62  ;;  %2942 = vmatprep.subr.bf16.mxu0 %v3580_v61  ;;  %v323_v62 = vrot.slane %v4673_v58, %v4282_v31 }
 0x161   :  { %v331_v61 = vrot.slane %v4673_v58, %v330_v59 }
 0x163   :  { %2779 = vmatpush1.bf16.msra.mxu1 %v3575_v63  ;;  %2943 = vmatpush1.bf16.msra.mxu0 %v3578_v0 }
 0x164   :  { %2780 = vmatprep.subr.bf16.mxu1 %v3583_v1  ;;  %2944 = vmatprep.subr.bf16.mxu0 %v3586_v2 }
 0x167   :  { %2781 = vmatpush1.bf16.msra.mxu1 %v3581_v3  ;;  %2945 = vmatpush1.bf16.msra.mxu0 %v3584_v4 }
 0x168   :  { %2782 = vmatprep.subr.bf16.mxu1 %v3589_v5  ;;  %2946 = vmatprep.subr.bf16.mxu0 %v3592_v6 }
 0x16b   :  { %2783 = vmatpush1.bf16.msra.mxu1 %v3587_v7  ;;  %2947 = vmatpush1.bf16.msra.mxu0 %v3590_v8 }
 0x16c   :  { %2784 = vmatprep.subr.bf16.mxu1 %v3595_v9  ;;  %2948 = vmatprep.subr.bf16.mxu0 %v3598_v10 }
 0x16f   :  { %2785 = vmatpush1.bf16.msra.mxu1 %v3593_v11  ;;  %2949 = vmatpush1.bf16.msra.mxu0 %v3596_v12 }
 0x170   :  { %2786 = vmatprep.subr.bf16.mxu1 %v3601_v13  ;;  %2950 = vmatprep.subr.bf16.mxu0 %v3604_v14 }
 0x173   :  { %2787 = vmatpush1.bf16.msra.mxu1 %v3599_v15  ;;  %2951 = vmatpush1.bf16.msra.mxu0 %v3602_v16 }
 0x174   :  { %2788 = vmatprep.subr.bf16.mxu1 %v3607_v17  ;;  %2952 = vmatprep.subr.bf16.mxu0 %v3610_v18 }
 0x177   :  { %2789 = vmatpush1.bf16.msra.mxu1 %v3605_v19  ;;  %2953 = vmatpush1.bf16.msra.mxu0 %v3608_v20 }
 0x178   :  { %2790 = vmatprep.subr.bf16.mxu1 %v3613_v21  ;;  %2954 = vmatprep.subr.bf16.mxu0 %v3616_v22 }
 0x17b   :  { %2791 = vmatpush1.bf16.msra.mxu1 %v3611_v23  ;;  %2955 = vmatpush1.bf16.msra.mxu0 %v3614_v24 }
 0x17c   :  { %2792 = vmatprep.subr.bf16.mxu1 %v3619_v25  ;;  %2956 = vmatprep.subr.bf16.mxu0 %v3622_v26 }
 0x17f   :  { %2793 = vmatpush1.bf16.msra.mxu1 %v3617_v27  ;;  %2957 = vmatpush1.bf16.msra.mxu0 %v3620_v30 }
 0x180   :  { %2794 = vmatprep.subr.bf16.mxu1 %v3625_v32  ;;  %2958 = vmatprep.subr.bf16.mxu0 %v3628_v33  ;;  %v3659_v32 = vld [vmem:[%s5321_s3 + $0x200] ss:$16 sps:$4 sm:$0xff]   ;;  %v3662_v33 = vld [vmem:[%s5321_s3 + $0x208] ss:$16 sps:$4 sm:$0xff]  }
 0x183   :  { %2795 = vmatpush1.bf16.msra.mxu1 %v3623_v34  ;;  %2959 = vmatpush1.bf16.msra.mxu0 %v3626_v35  ;;  %v3667_v35 = vld [vmem:[%s5321_s3 + $0x224] ss:$16 sps:$4 sm:$0xff]  }
 0x184   :  { %2796 = vmatprep.subr.bf16.mxu1 %v3631_v36  ;;  %2960 = vmatprep.subr.bf16.mxu0 %v3634_v37  ;;  %v3670_v36 = vld [vmem:[%s5321_s3 + $0x22c] ss:$16 sps:$4 sm:$0xff]  }
 0x187   :  { %2797 = vmatpush1.bf16.msra.mxu1 %v3629_v38  ;;  %2961 = vmatpush1.bf16.msra.mxu0 %v3632_v39  ;;  %v3665_v38 = vld [vmem:[%s5321_s3 + $0x220] ss:$16 sps:$4 sm:$0xff]   ;;  %v3668_v39 = vld [vmem:[%s5321_s3 + $0x228] ss:$16 sps:$4 sm:$0xff]  }
 0x188   :  { %2798 = vmatprep.subr.bf16.mxu1 %v3637_v40  ;;  %2962 = vmatprep.subr.bf16.mxu0 %v3640_v41  ;;  %v3673_v40 = vld [vmem:[%s5321_s3 + $0x244] ss:$16 sps:$4 sm:$0xff]   ;;  %v3676_v41 = vld [vmem:[%s5321_s3 + $0x24c] ss:$16 sps:$4 sm:$0xff]  }
 0x18b   :  { %2799 = vmatpush1.bf16.msra.mxu1 %v3635_v42  ;;  %2963 = vmatpush1.bf16.msra.mxu0 %v3638_v43  ;;  %v3671_v42 = vld [vmem:[%s5321_s3 + $0x240] ss:$16 sps:$4 sm:$0xff]   ;;  %v3674_v43 = vld [vmem:[%s5321_s3 + $0x248] ss:$16 sps:$4 sm:$0xff]  }
 0x18c   :  { %2800 = vmatprep.subr.bf16.mxu1 %v3643_v44  ;;  %2964 = vmatprep.subr.bf16.mxu0 %v3646_v45  ;;  %v3679_v44 = vld [vmem:[%s5321_s3 + $0x264] ss:$16 sps:$4 sm:$0xff]   ;;  %v3682_v45 = vld [vmem:[%s5321_s3 + $0x26c] ss:$16 sps:$4 sm:$0xff]  }
 0x18f   :  { %2801 = vmatpush1.bf16.msra.mxu1 %v3641_v46  ;;  %2965 = vmatpush1.bf16.msra.mxu0 %v3644_v47  ;;  %v326_v46 = vsub.s32 2, %v4273_v28  ;;  %v3677_v47 = vld [vmem:[%s5321_s3 + $0x260] ss:$16 sps:$4 sm:$0xff]  }
 0x190   :  { %2802 = vmatprep.subr.bf16.mxu1 %v3649_v48  ;;  %2966 = vmatprep.subr.bf16.mxu0 %v3652_v49  ;;  %v3680_v48 = vld [vmem:[%s5321_s3 + $0x268] ss:$16 sps:$4 sm:$0xff]   ;;  %v3685_v49 = vld [vmem:[%s5321_s3 + $0x284] ss:$16 sps:$4 sm:$0xff]  }
 0x193   :  { %2803 = vmatpush1.bf16.msra.mxu1 %v3647_v50  ;;  %2967 = vmatpush1.bf16.msra.mxu0 %v3650_v51  ;;  %v3688_v50 = vld [vmem:[%s5321_s3 + $0x28c] ss:$16 sps:$4 sm:$0xff]   ;;  %v327_v51 = vrot.slane %v4673_v58, %v326_v46 }
 0x194   :  { %2804 = vmatprep.subr.bf16.mxu1 %v3655_v52  ;;  %2968 = vmatprep.subr.bf16.mxu0 %v3658_v53  ;;  %v3683_v52 = vld [vmem:[%s5321_s3 + $0x280] ss:$16 sps:$4 sm:$0xff]   ;;  %v3686_v53 = vld [vmem:[%s5321_s3 + $0x288] ss:$16 sps:$4 sm:$0xff]  }
 0x197   :  { %2805 = vmatpush1.bf16.msra.mxu1 %v3653_v54  ;;  %2969 = vmatpush1.bf16.msra.mxu0 %v3656_v55  ;;  %v3691_v54 = vld [vmem:[%s5321_s3 + $0x2a4] ss:$16 sps:$4 sm:$0xff]   ;;  %v3694_v55 = vld [vmem:[%s5321_s3 + $0x2ac] ss:$16 sps:$4 sm:$0xff]  }
 0x198   :  { %2815 = vmatprep.subr.bf16.mxu1 %v3661_v56  ;;  %2979 = vmatprep.subr.bf16.mxu0 %v3664_v57  ;;  %v3689_v57 = vld [vmem:[%s5321_s3 + $0x2a0] ss:$16 sps:$4 sm:$0xff]  }
 0x1ed   :  { %v1030_v63 = vpop.f32.mrb[0].mxu1  ;;  %v4683_v0 = vpop.f32.mrb[4].mxu0 }
 0x1ee   :  { %v1031_v1 = vadd.f32 %v1030_v63, %v319_v60  ;;  %v1032_v2 = vpop.f32.mrb[1].mxu1  ;;  %v1073_v3 = vpop.f32.mrb[5].mxu0  ;;  %v4750_v56 = vadd.f32 %v4683_v0, %v327_v51  ;;  %v3692_v60 = vld [vmem:[%s5321_s3 + $0x2a8] ss:$16 sps:$4 sm:$0xff]   ;;  %v338_v0 = vsub.s32 5, %v4273_v28 }
 0x1ef   :  { %v1033_v4 = vadd.f32 %v1032_v2, %v323_v62  ;;  %v1074_v5 = vadd.f32 %v1073_v3, %v331_v61  ;;  %v1034_v6 = vpop.f32.mrb[2].mxu1  ;;  %v1075_v7 = vpop.f32.mrb[6].mxu0  ;;  %v3697_v62 = vld [vmem:[%s5321_s3 + $0x2c4] ss:$16 sps:$4 sm:$0xff]   ;;  %v3700_v61 = vld [vmem:[%s5321_s3 + $0x2cc] ss:$16 sps:$4 sm:$0xff]  }
 0x1f0   :  { %v1160_v8 = vsub.f32 0.0, %v1031_v1  ;;  %v1035_v9 = vpop.f32.mrb[3].mxu1  ;;  %v1076_v10 = vpop.f32.mrb[7].mxu0  ;;  %v1162_v63 = vsub.f32 0.0, %v4750_v56  ;;  %v3698_v2 = vld [vmem:[%s5321_s3 + $0x2c8] ss:$16 sps:$4 sm:$0xff]   ;;  %v339_v6 = vrot.slane %v4673_v58, %v338_v0 }
 0x1f1   :  { %v1161_v11 = vsub.f32 0.0, %v1033_v4  ;;  %v1163_v12 = vsub.f32 0.0, %v1074_v5  ;;  %v3703_v3 = vld [vmem:[%s5321_s3 + $0x2e4] ss:$16 sps:$4 sm:$0xff]   ;;  %v3701_v7 = vld [vmem:[%s5321_s3 + $0x2e0] ss:$16 sps:$4 sm:$0xff]  }
 0x1f2   :  { %v1168_v13 = vmul.f32 1.442695, %v1160_v8  ;;  %v3704_v8 = vld [vmem:[%s5321_s3 + $0x2e8] ss:$16 sps:$4 sm:$0xff]  }
 0x1f3   :  { %v1170_v14 = vmul.f32 1.442695, %v1161_v11  ;;  %v1174_v15 = vmul.f32 1.442695, %v1163_v12  ;;  %v3709_v11 = vld [vmem:[%s5321_s3 + $0x304] ss:$16 sps:$4 sm:$0xff]  }
 0x1f4   :  { %3955 = vpow2.f32 %v1168_v13  ;;  %v3712_v12 = vld [vmem:[%s5321_s3 + $0x30c] ss:$16 sps:$4 sm:$0xff]   ;;  %v3740_v51 = vld [vmem:[%s5321_s3 + $0x3a8] ss:$16 sps:$4 sm:$0xff]  }
 0x1f5   :  { %3957 = vpow2.f32 %v1170_v14 }
 0x1f6   :  { %3959 = vpow2.f32 %v1174_v15 }
 0x1fe   :  { %v3956_v16 = vpop.eup %3955 }
 0x1ff   :  { %v1184_v17 = vadd.f32 1.0, %v3956_v16  ;;  %v3958_v18 = vpop.eup %3957 }
 0x200   :  { %v3960_v19 = vpop.eup %3959  ;;  %v1185_v20 = vadd.f32 1.0, %v3958_v18 }
 0x201   :  { %3961 = vrcp.f32 %v1184_v17  ;;  %v1187_v21 = vadd.f32 1.0, %v3960_v19 }
 0x202   :  { %3963 = vrcp.f32 %v1185_v20  ;;  %v3707_v20 = vld [vmem:[%s5321_s3 + $0x300] ss:$16 sps:$4 sm:$0xff]  }
 0x203   :  { %3965 = vrcp.f32 %v1187_v21  ;;  %v3710_v21 = vld [vmem:[%s5321_s3 + $0x308] ss:$16 sps:$4 sm:$0xff]  }
 0x20b   :  { %v3962_v22 = vpop.eup %3961 }
 0x20c   :  { %v3964_v23 = vpop.eup %3963  ;;  %v1200_v24 = vmul.f32 %v3962_v22, %v1031_v1  ;;  %v3695_v1 = vld [vmem:[%s5321_s3 + $0x2c0] ss:$16 sps:$4 sm:$0xff]  }
 0x20d   :  { %v3966_v25 = vpop.eup %3965  ;;  %v1201_v26 = vmul.f32 %v3964_v23, %v1033_v4  ;;  %v3706_v4 = vld [vmem:[%s5321_s3 + $0x2ec] ss:$16 sps:$4 sm:$0xff]   ;;  %v3715_v23 = vld [vmem:[%s5321_s3 + $0x324] ss:$16 sps:$4 sm:$0xff]  }
 0x20e   :  { %v1203_v27 = vmul.f32 %v3966_v25, %v1074_v5  ;;  %v1208_v34 = vpack.c.bf16 %v1200_v24, %v1200_v24  ;;  %v1172_v5 = vmul.f32 1.442695, %v1162_v63  ;;  %v3718_v24 = vld [vmem:[%s5321_s3 + $0x32c] ss:$16 sps:$4 sm:$0xff]   ;;  %v3752_v63 = vld [vmem:[%s5321_s3 + $0x3e8] ss:$16 sps:$4 sm:$0xff]  }
 0x20f   :  { %v1209_v30 = vpack.c.bf16 %v1201_v26, %v1201_v26  ;;  %v3713_v26 = vld [vmem:[%s5321_s3 + $0x320] ss:$16 sps:$4 sm:$0xff]  }
 0x210   :  { %v1211_v37 = vpack.c.bf16 %v1203_v27, %v1203_v27  ;;  %3967 = vpow2.f32 %v1172_v5  ;;  %v3716_v27 = vld [vmem:[%s5321_s3 + $0x328] ss:$16 sps:$4 sm:$0xff]   ;;  %v3755_v5 = vld [vmem:[%s5321_s3 + $0x400] ss:$16 sps:$4 sm:$0xff]  }
 0x211   :  { %2806 = vmatprep.mubr.bf16.mxu1 %v1209_v30  ;;  %2970 = vmatprep.mubr.bf16.mxu0 %v1209_v30  ;;  %v3721_v30 = vld [vmem:[%s5321_s3 + $0x344] ss:$16 sps:$4 sm:$0xff]  }
 0x212   :  { %2807 = vmatmul.mubr.bf16.vlgmr.msra.gmra.mrb[8].mxu1 %v1208_v34  ;;  %2971 = vmatmul.mubr.bf16.vlgmr.msra.gmra.mrb[12].mxu0 %v1208_v34  ;;  %v3722_v34 = vld [vmem:[%s5321_s3 + $0x348] ss:$16 sps:$4 sm:$0xff]  }
 0x213   :  { %2816 = vmatpush1.bf16.msra.mxu1 %v3659_v32  ;;  %2980 = vmatpush1.bf16.msra.mxu0 %v3662_v33  ;;  %v3724_v32 = vld [vmem:[%s5321_s3 + $0x34c] ss:$16 sps:$4 sm:$0xff]   ;;  %v3719_v33 = vld [vmem:[%s5321_s3 + $0x340] ss:$16 sps:$4 sm:$0xff]  }
 0x214   :  { %2847 = vmatprep.mubr.bf16.mxu1 %v1211_v37  ;;  %3011 = vmatprep.mubr.bf16.mxu0 %v1211_v37  ;;  %v3730_v37 = vld [vmem:[%s5321_s3 + $0x36c] ss:$16 sps:$4 sm:$0xff]  }
 0x215   :  { %2817 = vmatprep.subr.bf16.mxu1 %v3667_v35  ;;  %2981 = vmatprep.subr.bf16.mxu0 %v3670_v36  ;;  %v3727_v36 = vld [vmem:[%s5321_s3 + $0x364] ss:$16 sps:$4 sm:$0xff]  }
 0x217   :  { %2818 = vmatpush1.bf16.msra.mxu1 %v3665_v38  ;;  %2982 = vmatpush1.bf16.msra.mxu0 %v3668_v39  ;;  %v3725_v39 = vld [vmem:[%s5321_s3 + $0x360] ss:$16 sps:$4 sm:$0xff]  }
 0x218   :  { %2819 = vmatprep.subr.bf16.mxu1 %v3673_v40  ;;  %2983 = vmatprep.subr.bf16.mxu0 %v3676_v41  ;;  %v3728_v40 = vld [vmem:[%s5321_s3 + $0x368] ss:$16 sps:$4 sm:$0xff]   ;;  %v3733_v41 = vld [vmem:[%s5321_s3 + $0x384] ss:$16 sps:$4 sm:$0xff]  }
 0x21a   :  { %v3968_v35 = vpop.eup %3967 }
 0x21b   :  { %2820 = vmatpush1.bf16.msra.mxu1 %v3671_v42  ;;  %2984 = vmatpush1.bf16.msra.mxu0 %v3674_v43  ;;  %v1186_v38 = vadd.f32 1.0, %v3968_v35  ;;  %v3736_v42 = vld [vmem:[%s5321_s3 + $0x38c] ss:$16 sps:$4 sm:$0xff]  }
 0x21c   :  { %2821 = vmatprep.subr.bf16.mxu1 %v3679_v44  ;;  %2985 = vmatprep.subr.bf16.mxu0 %v3682_v45  ;;  %v3731_v44 = vld [vmem:[%s5321_s3 + $0x380] ss:$16 sps:$4 sm:$0xff]   ;;  %v3734_v45 = vld [vmem:[%s5321_s3 + $0x388] ss:$16 sps:$4 sm:$0xff]   ;;  %v3790_v35 = vld [vmem:[%s5321_s3 + $0x4ac] ss:$16 sps:$4 sm:$0xff]  }
 0x21f   :  { %2822 = vmatpush1.bf16.msra.mxu1 %v3677_v47  ;;  %2986 = vmatpush1.bf16.msra.mxu0 %v3680_v48  ;;  %v3739_v48 = vld [vmem:[%s5321_s3 + $0x3a4] ss:$16 sps:$4 sm:$0xff]  }
 0x220   :  { %2823 = vmatprep.subr.bf16.mxu1 %v3685_v49  ;;  %2987 = vmatprep.subr.bf16.mxu0 %v3688_v50  ;;  %v3742_v49 = vld [vmem:[%s5321_s3 + $0x3ac] ss:$16 sps:$4 sm:$0xff]   ;;  %v3737_v50 = vld [vmem:[%s5321_s3 + $0x3a0] ss:$16 sps:$4 sm:$0xff]  }
 0x223   :  { %2824 = vmatpush1.bf16.msra.mxu1 %v3683_v52  ;;  %2988 = vmatpush1.bf16.msra.mxu0 %v3686_v53  ;;  %v3745_v52 = vld [vmem:[%s5321_s3 + $0x3c4] ss:$16 sps:$4 sm:$0xff]   ;;  %v3748_v53 = vld [vmem:[%s5321_s3 + $0x3cc] ss:$16 sps:$4 sm:$0xff]  }
 0x224   :  { %2825 = vmatprep.subr.bf16.mxu1 %v3691_v54  ;;  %2989 = vmatprep.subr.bf16.mxu0 %v3694_v55  ;;  %v3743_v54 = vld [vmem:[%s5321_s3 + $0x3c0] ss:$16 sps:$4 sm:$0xff]   ;;  %v3746_v55 = vld [vmem:[%s5321_s3 + $0x3c8] ss:$16 sps:$4 sm:$0xff]  }
 0x227   :  { %2826 = vmatpush1.bf16.msra.mxu1 %v3689_v57  ;;  %2990 = vmatpush1.bf16.msra.mxu0 %v3692_v60  ;;  %v3751_v57 = vld [vmem:[%s5321_s3 + $0x3e4] ss:$16 sps:$4 sm:$0xff]   ;;  %v3754_v60 = vld [vmem:[%s5321_s3 + $0x3ec] ss:$16 sps:$4 sm:$0xff]  }
 0x228   :  { %2827 = vmatprep.subr.bf16.mxu1 %v3697_v62  ;;  %2991 = vmatprep.subr.bf16.mxu0 %v3700_v61  ;;  %v3749_v61 = vld [vmem:[%s5321_s3 + $0x3e0] ss:$16 sps:$4 sm:$0xff]  }
 0x22b   :  { %2828 = vmatpush1.bf16.msra.mxu1 %v3695_v1  ;;  %2992 = vmatpush1.bf16.msra.mxu0 %v3698_v2  ;;  %v3757_v2 = vld [vmem:[%s5321_s3 + $0x404] ss:$16 sps:$4 sm:$0xff]  }
 0x22c   :  { %2829 = vmatprep.subr.bf16.mxu1 %v3703_v3  ;;  %2993 = vmatprep.subr.bf16.mxu0 %v3706_v4  ;;  %v3760_v3 = vld [vmem:[%s5321_s3 + $0x40c] ss:$16 sps:$4 sm:$0xff]  }
 0x22d   :  { %v4785_v9 = vpop.f32.mrb[4].mxu1  ;;  %v4787_v10 = vpop.f32.mrb[8].mxu0 }
 0x22e   :  { %v1114_v13 = vpop.f32.mrb[5].mxu1  ;;  %v4795_v14 = vpop.f32.mrb[9].mxu0 }
 0x22f   :  { %v4797_v15 = vadd.f32 %v1114_v13, %v339_v6  ;;  %v1116_v16 = vpop.f32.mrb[6].mxu1  ;;  %v1157_v17 = vpop.f32.mrb[10].mxu0  ;;  %2830 = vmatpush1.bf16.msra.mxu1 %v3701_v7  ;;  %2994 = vmatpush1.bf16.msra.mxu0 %v3704_v8  ;;  %v3763_v8 = vld [vmem:[%s5321_s3 + $0x424] ss:$16 sps:$4 sm:$0xff]   ;;  %v3764_v13 = vld [vmem:[%s5321_s3 + $0x428] ss:$16 sps:$4 sm:$0xff]  }
 0x230   :  { %v1117_v18 = vpop.f32.mrb[7].mxu1  ;;  %v1158_v19 = vpop.f32.mrb[11].mxu0  ;;  %2831 = vmatprep.subr.bf16.mxu1 %v3709_v11  ;;  %2995 = vmatprep.subr.bf16.mxu0 %v3712_v12  ;;  %v3766_v11 = vld [vmem:[%s5321_s3 + $0x42c] ss:$16 sps:$4 sm:$0xff]   ;;  %v3761_v12 = vld [vmem:[%s5321_s3 + $0x420] ss:$16 sps:$4 sm:$0xff]  }
 0x231   :  { %v1165_v22 = vsub.f32 0.0, %v4797_v15  ;;  %v3772_v16 = vld [vmem:[%s5321_s3 + $0x44c] ss:$16 sps:$4 sm:$0xff]   ;;  %v3767_v17 = vld [vmem:[%s5321_s3 + $0x440] ss:$16 sps:$4 sm:$0xff]  }
 0x232   :  { %v3770_v18 = vld [vmem:[%s5321_s3 + $0x448] ss:$16 sps:$4 sm:$0xff]   ;;  %v3775_v19 = vld [vmem:[%s5321_s3 + $0x464] ss:$16 sps:$4 sm:$0xff]  }
 0x233   :  { %v1178_v25 = vmul.f32 1.442695, %v1165_v22  ;;  %2832 = vmatpush1.bf16.msra.mxu1 %v3707_v20  ;;  %2996 = vmatpush1.bf16.msra.mxu0 %v3710_v21  ;;  %v3778_v20 = vld [vmem:[%s5321_s3 + $0x46c] ss:$16 sps:$4 sm:$0xff]   ;;  %v334_v21 = vsub.s32 4, %v4273_v28 }
 0x234   :  { %2833 = vmatprep.subr.bf16.mxu1 %v3715_v23  ;;  %2997 = vmatprep.subr.bf16.mxu0 %v3718_v24  ;;  %v3773_v22 = vld [vmem:[%s5321_s3 + $0x460] ss:$16 sps:$4 sm:$0xff]   ;;  %v346_v23 = vsub.s32 7, %v4273_v28  ;;  %v3776_v24 = vld [vmem:[%s5321_s3 + $0x468] ss:$16 sps:$4 sm:$0xff]  }
 0x235   :  { %3969 = vpow2.f32 %v1178_v25  ;;  %v3781_v25 = vld [vmem:[%s5321_s3 + $0x484] ss:$16 sps:$4 sm:$0xff]  }
 0x236   :  { %3971 = vrcp.f32 %v1186_v38 }
 0x237   :  { %2834 = vmatpush1.bf16.msra.mxu1 %v3713_v26  ;;  %2998 = vmatpush1.bf16.msra.mxu0 %v3716_v27  ;;  %v3784_v26 = vld [vmem:[%s5321_s3 + $0x48c] ss:$16 sps:$4 sm:$0xff]   ;;  %v335_v27 = vrot.slane %v4673_v58, %v334_v21 }
 0x238   :  { %2835 = vmatprep.subr.bf16.mxu1 %v3721_v30  ;;  %2999 = vmatprep.subr.bf16.mxu0 %v3724_v32  ;;  %v3779_v30 = vld [vmem:[%s5321_s3 + $0x480] ss:$16 sps:$4 sm:$0xff]   ;;  %v347_v32 = vrot.slane %v4673_v58, %v346_v23  ;;  %v3844_v21 = vld [vmem:[%s5321_s3 + $0x5cc] ss:$16 sps:$4 sm:$0xff]   ;;  %v3842_v23 = vld [vmem:[%s5321_s3 + $0x5c8] ss:$16 sps:$4 sm:$0xff]  }
 0x23a   :  { %v4969_v38 = vadd.f32 %v4795_v14, %v347_v32  ;;  %v3791_v14 = vld [vmem:[%s5321_s3 + $0x4c0] ss:$16 sps:$4 sm:$0xff]  }
 0x23b   :  { %2836 = vmatpush1.bf16.msra.mxu1 %v3719_v33  ;;  %3000 = vmatpush1.bf16.msra.mxu0 %v3722_v34  ;;  %v3782_v33 = vld [vmem:[%s5321_s3 + $0x488] ss:$16 sps:$4 sm:$0xff]   ;;  %v3787_v34 = vld [vmem:[%s5321_s3 + $0x4a4] ss:$16 sps:$4 sm:$0xff]  }
 0x23c   :  { %2837 = vmatprep.subr.bf16.mxu1 %v3727_v36  ;;  %3001 = vmatprep.subr.bf16.mxu0 %v3730_v37  ;;  %v4963_v36 = vadd.f32 %v4785_v9, %v335_v27  ;;  %v3785_v37 = vld [vmem:[%s5321_s3 + $0x4a0] ss:$16 sps:$4 sm:$0xff]   ;;  %v3796_v9 = vld [vmem:[%s5321_s3 + $0x4cc] ss:$16 sps:$4 sm:$0xff]  }
 0x23f   :  { %v3970_v43 = vpop.eup %3969  ;;  %2838 = vmatpush1.bf16.msra.mxu1 %v3725_v39  ;;  %3002 = vmatpush1.bf16.msra.mxu0 %v3728_v40  ;;  %v3788_v39 = vld [vmem:[%s5321_s3 + $0x4a8] ss:$16 sps:$4 sm:$0xff]   ;;  %v3793_v40 = vld [vmem:[%s5321_s3 + $0x4c4] ss:$16 sps:$4 sm:$0xff]  }
 0x240   :  { %v1189_v47 = vadd.f32 1.0, %v3970_v43  ;;  %2839 = vmatprep.subr.bf16.mxu1 %v3733_v41  ;;  %3003 = vmatprep.subr.bf16.mxu0 %v3736_v42  ;;  %v3972_v62 = vpop.eup %3971  ;;  %v1164_v41 = vsub.f32 0.0, %v4963_v36  ;;  %v1167_v42 = vsub.f32 0.0, %v4969_v38  ;;  %v3794_v43 = vld [vmem:[%s5321_s3 + $0x4c8] ss:$16 sps:$4 sm:$0xff]  }
 0x241   :  { %v1202_v1 = vmul.f32 %v3972_v62, %v4750_v56  ;;  %v3758_v56 = vld [vmem:[%s5321_s3 + $0x408] ss:$16 sps:$4 sm:$0xff]  }
 0x242   :  { %3973 = vrcp.f32 %v1189_v47  ;;  %v1176_v47 = vmul.f32 1.442695, %v1164_v41  ;;  %v3812_v62 = vld [vmem:[%s5321_s3 + $0x528] ss:$16 sps:$4 sm:$0xff]  }
 0x243   :  { %2840 = vmatpush1.bf16.msra.mxu1 %v3731_v44  ;;  %3004 = vmatpush1.bf16.msra.mxu0 %v3734_v45  ;;  %v1210_v6 = vpack.c.bf16 %v1202_v1, %v1202_v1  ;;  %v3799_v44 = vld [vmem:[%s5321_s3 + $0x4e4] ss:$16 sps:$4 sm:$0xff]   ;;  %v3802_v45 = vld [vmem:[%s5321_s3 + $0x4ec] ss:$16 sps:$4 sm:$0xff]  }
 0x244   :  { %2841 = vmatprep.subr.bf16.mxu1 %v3739_v48  ;;  %3005 = vmatprep.subr.bf16.mxu0 %v3742_v49  ;;  %v3797_v48 = vld [vmem:[%s5321_s3 + $0x4e0] ss:$16 sps:$4 sm:$0xff]   ;;  %v1182_v49 = vmul.f32 1.442695, %v1167_v42  ;;  %3975 = vpow2.f32 %v1176_v47  ;;  %v3860_v42 = vld [vmem:[%s5321_s3 + $0x628] ss:$16 sps:$4 sm:$0xff]  }
 0x245   :  { %v3866_v47 = vld [vmem:[%s5321_s3 + $0x648] ss:$16 sps:$4 sm:$0xff]  }
 0x246   :  { %3977 = vpow2.f32 %v1182_v49  ;;  %v3874_v49 = vld [vmem:[%s5321_s3 + $0x66c] ss:$16 sps:$4 sm:$0xff]  }
 0x247   :  { %2842 = vmatpush1.bf16.msra.mxu1 %v3737_v50  ;;  %3006 = vmatpush1.bf16.msra.mxu0 %v3740_v51  ;;  %v3800_v50 = vld [vmem:[%s5321_s3 + $0x4e8] ss:$16 sps:$4 sm:$0xff]   ;;  %v3805_v51 = vld [vmem:[%s5321_s3 + $0x504] ss:$16 sps:$4 sm:$0xff]  }
 0x248   :  { %2843 = vmatprep.subr.bf16.mxu1 %v3745_v52  ;;  %3007 = vmatprep.subr.bf16.mxu0 %v3748_v53  ;;  %v3808_v52 = vld [vmem:[%s5321_s3 + $0x50c] ss:$16 sps:$4 sm:$0xff]   ;;  %v3803_v53 = vld [vmem:[%s5321_s3 + $0x500] ss:$16 sps:$4 sm:$0xff]  }
 0x24b   :  { %2844 = vmatpush1.bf16.msra.mxu1 %v3743_v54  ;;  %3008 = vmatpush1.bf16.msra.mxu0 %v3746_v55  ;;  %v3806_v54 = vld [vmem:[%s5321_s3 + $0x508] ss:$16 sps:$4 sm:$0xff]   ;;  %v3811_v55 = vld [vmem:[%s5321_s3 + $0x524] ss:$16 sps:$4 sm:$0xff]  }
 0x24c   :  { %v3974_v0 = vpop.eup %3973  ;;  %2845 = vmatprep.subr.bf16.mxu1 %v3751_v57  ;;  %3009 = vmatprep.subr.bf16.mxu0 %v3754_v60  ;;  %v3814_v57 = vld [vmem:[%s5321_s3 + $0x52c] ss:$16 sps:$4 sm:$0xff]   ;;  %v3809_v60 = vld [vmem:[%s5321_s3 + $0x520] ss:$16 sps:$4 sm:$0xff]  }
 0x24d   :  { %v1205_v4 = vmul.f32 %v3974_v0, %v4797_v15  ;;  %v3769_v15 = vld [vmem:[%s5321_s3 + $0x444] ss:$16 sps:$4 sm:$0xff]   ;;  %v3815_v0 = vld [vmem:[%s5321_s3 + $0x540] ss:$16 sps:$4 sm:$0xff]  }
 0x24e   :  { %v3976_v1 = vpop.eup %3975 }
 0x24f   :  { %2846 = vmatpush1.bf16.msra.mxu1 %v3749_v61  ;;  %3010 = vmatpush1.bf16.msra.mxu0 %v3752_v63  ;;  %v1213_v7 = vpack.c.bf16 %v1205_v4, %v1205_v4  ;;  %v3817_v61 = vld [vmem:[%s5321_s3 + $0x544] ss:$16 sps:$4 sm:$0xff]   ;;  %v3820_v63 = vld [vmem:[%s5321_s3 + $0x54c] ss:$16 sps:$4 sm:$0xff]  }
 0x250   :  { %2856 = vmatprep.subr.bf16.mxu1 %v3757_v2  ;;  %3020 = vmatprep.subr.bf16.mxu0 %v3760_v3  ;;  %v3818_v2 = vld [vmem:[%s5321_s3 + $0x548] ss:$16 sps:$4 sm:$0xff]   ;;  %v3823_v3 = vld [vmem:[%s5321_s3 + $0x564] ss:$16 sps:$4 sm:$0xff]   ;;  %v3826_v4 = vld [vmem:[%s5321_s3 + $0x56c] ss:$16 sps:$4 sm:$0xff]  }
 0x252   :  { %2848 = vmatmul.mubr.bf16.vlgmr.msra.gmra.mrb[8].mxu1 %v1210_v6  ;;  %3012 = vmatmul.mubr.bf16.vlgmr.msra.gmra.mrb[12].mxu0 %v1210_v6  ;;  %v1188_v6 = vadd.f32 1.0, %v3976_v1  ;;  %v3889_v1 = vld [vmem:[%s5321_s3 + $0x6c4] ss:$16 sps:$4 sm:$0xff]  }
 0x253   :  { %2857 = vmatpush1.bf16.msra.mxu1 %v3755_v5  ;;  %2888 = vmatprep.mubr.bf16.mxu1 %v1213_v7  ;;  %v3978_v5 = vpop.eup %3977 }
 0x254   :  { %3021 = vmatpush1.bf16.msra.mxu0 %v3758_v56  ;;  %3052 = vmatprep.mubr.bf16.mxu0 %v1213_v7  ;;  %v3821_v56 = vld [vmem:[%s5321_s3 + $0x560] ss:$16 sps:$4 sm:$0xff]   ;;  %v3824_v7 = vld [vmem:[%s5321_s3 + $0x568] ss:$16 sps:$4 sm:$0xff]   ;;  %3979 = vrcp.f32 %v1188_v6  ;;  %v3898_v6 = vld [vmem:[%s5321_s3 + $0x6ec] ss:$16 sps:$4 sm:$0xff]  }
 0x255   :  { %2858 = vmatprep.subr.bf16.mxu1 %v3763_v8  ;;  %3022 = vmatprep.subr.bf16.mxu0 %v3766_v11  ;;  %v3829_v8 = vld [vmem:[%s5321_s3 + $0x584] ss:$16 sps:$4 sm:$0xff]   ;;  %v1191_v11 = vadd.f32 1.0, %v3978_v5 }
 0x256   :  { %v3895_v5 = vld [vmem:[%s5321_s3 + $0x6e4] ss:$16 sps:$4 sm:$0xff]  }
 0x257   :  { %2859 = vmatpush1.bf16.msra.mxu1 %v3761_v12  ;;  %v3832_v12 = vld [vmem:[%s5321_s3 + $0x58c] ss:$16 sps:$4 sm:$0xff]   ;;  %3981 = vrcp.f32 %v1191_v11  ;;  %v3901_v11 = vld [vmem:[%s5321_s3 + $0x704] ss:$16 sps:$4 sm:$0xff]  }
 0x258   :  { %3023 = vmatpush1.bf16.msra.mxu0 %v3764_v13  ;;  %2860 = vmatprep.subr.bf16.mxu1 %v3769_v15  ;;  %v3827_v13 = vld [vmem:[%s5321_s3 + $0x580] ss:$16 sps:$4 sm:$0xff]   ;;  %v3830_v15 = vld [vmem:[%s5321_s3 + $0x588] ss:$16 sps:$4 sm:$0xff]  }
 0x259   :  { %3024 = vmatprep.subr.bf16.mxu0 %v3772_v16  ;;  %v3835_v16 = vld [vmem:[%s5321_s3 + $0x5a4] ss:$16 sps:$4 sm:$0xff]  }
 0x25b   :  { %2861 = vmatpush1.bf16.msra.mxu1 %v3767_v17  ;;  %v3838_v17 = vld [vmem:[%s5321_s3 + $0x5ac] ss:$16 sps:$4 sm:$0xff]  }
 0x25c   :  { %3025 = vmatpush1.bf16.msra.mxu0 %v3770_v18  ;;  %2862 = vmatprep.subr.bf16.mxu1 %v3775_v19  ;;  %v3833_v18 = vld [vmem:[%s5321_s3 + $0x5a0] ss:$16 sps:$4 sm:$0xff]   ;;  %v3836_v19 = vld [vmem:[%s5321_s3 + $0x5a8] ss:$16 sps:$4 sm:$0xff]  }
 0x25d   :  { %3026 = vmatprep.subr.bf16.mxu0 %v3778_v20  ;;  %v3841_v20 = vld [vmem:[%s5321_s3 + $0x5c4] ss:$16 sps:$4 sm:$0xff]  }
 0x25f   :  { %2863 = vmatpush1.bf16.msra.mxu1 %v3773_v22  ;;  %v3839_v22 = vld [vmem:[%s5321_s3 + $0x5c0] ss:$16 sps:$4 sm:$0xff]  }
 0x260   :  { %3027 = vmatpush1.bf16.msra.mxu0 %v3776_v24  ;;  %2864 = vmatprep.subr.bf16.mxu1 %v3781_v25  ;;  %v3847_v24 = vld [vmem:[%s5321_s3 + $0x5e4] ss:$16 sps:$4 sm:$0xff]   ;;  %v3980_v25 = vpop.eup %3979 }
 0x261   :  { %3028 = vmatprep.subr.bf16.mxu0 %v3784_v26  ;;  %v3850_v26 = vld [vmem:[%s5321_s3 + $0x5ec] ss:$16 sps:$4 sm:$0xff]   ;;  %v3982_v27 = vpop.eup %3981  ;;  %v1204_v32 = vmul.f32 %v3980_v25, %v4963_v36  ;;  %v3851_v36 = vld [vmem:[%s5321_s3 + $0x600] ss:$16 sps:$4 sm:$0xff]   ;;  %v3919_v25 = vld [vmem:[%s5321_s3 + $0x764] ss:$16 sps:$4 sm:$0xff]  }
 0x263   :  { %2865 = vmatpush1.bf16.msra.mxu1 %v3779_v30  ;;  %v3845_v30 = vld [vmem:[%s5321_s3 + $0x5e0] ss:$16 sps:$4 sm:$0xff]  }
 0x264   :  { %3029 = vmatpush1.bf16.msra.mxu0 %v3782_v33  ;;  %2866 = vmatprep.subr.bf16.mxu1 %v3787_v34  ;;  %v3848_v33 = vld [vmem:[%s5321_s3 + $0x5e8] ss:$16 sps:$4 sm:$0xff]   ;;  %v3853_v34 = vld [vmem:[%s5321_s3 + $0x604] ss:$16 sps:$4 sm:$0xff]  }
 0x265   :  { %3030 = vmatprep.subr.bf16.mxu0 %v3790_v35  ;;  %v3856_v35 = vld [vmem:[%s5321_s3 + $0x60c] ss:$16 sps:$4 sm:$0xff]  }
 0x267   :  { %2867 = vmatpush1.bf16.msra.mxu1 %v3785_v37  ;;  %v1207_v37 = vmul.f32 %v3982_v27, %v4969_v38  ;;  %v3862_v38 = vld [vmem:[%s5321_s3 + $0x62c] ss:$16 sps:$4 sm:$0xff]  }
 0x268   :  { %3031 = vmatpush1.bf16.msra.mxu0 %v3788_v39  ;;  %2868 = vmatprep.subr.bf16.mxu1 %v3793_v40  ;;  %v1212_v39 = vpack.c.bf16 %v1204_v32, %v1204_v32  ;;  %v3854_v40 = vld [vmem:[%s5321_s3 + $0x608] ss:$16 sps:$4 sm:$0xff]  }
 0x269   :  { %3032 = vmatprep.subr.bf16.mxu0 %v3796_v9  ;;  %v3859_v9 = vld [vmem:[%s5321_s3 + $0x624] ss:$16 sps:$4 sm:$0xff]   ;;  %v1215_v41 = vpack.c.bf16 %v1207_v37, %v1207_v37  ;;  %v3920_v32 = vld [vmem:[%s5321_s3 + $0x768] ss:$16 sps:$4 sm:$0xff]  }
 0x26a   :  { %v3926_v37 = vld [vmem:[%s5321_s3 + $0x788] ss:$16 sps:$4 sm:$0xff]  }
 0x26b   :  { %2869 = vmatpush1.bf16.msra.mxu1 %v3791_v14  ;;  %v3857_v14 = vld [vmem:[%s5321_s3 + $0x620] ss:$16 sps:$4 sm:$0xff]  }
 0x26c   :  { %3033 = vmatpush1.bf16.msra.mxu0 %v3794_v43  ;;  %2870 = vmatprep.subr.bf16.mxu1 %v3799_v44  ;;  %v3865_v43 = vld [vmem:[%s5321_s3 + $0x644] ss:$16 sps:$4 sm:$0xff]   ;;  %v3868_v44 = vld [vmem:[%s5321_s3 + $0x64c] ss:$16 sps:$4 sm:$0xff]  }
 0x26d   :  { %3034 = vmatprep.subr.bf16.mxu0 %v3802_v45  ;;  %v3863_v45 = vld [vmem:[%s5321_s3 + $0x640] ss:$16 sps:$4 sm:$0xff]  }
 0x26f   :  { %2871 = vmatpush1.bf16.msra.mxu1 %v3797_v48  ;;  %v3871_v48 = vld [vmem:[%s5321_s3 + $0x664] ss:$16 sps:$4 sm:$0xff]  }
 0x270   :  { %3035 = vmatpush1.bf16.msra.mxu0 %v3800_v50  ;;  %2872 = vmatprep.subr.bf16.mxu1 %v3805_v51  ;;  %v342_v50 = vsub.s32 6, %v4273_v28  ;;  %v3869_v51 = vld [vmem:[%s5321_s3 + $0x660] ss:$16 sps:$4 sm:$0xff]  }
 0x271   :  { %3036 = vmatprep.subr.bf16.mxu0 %v3808_v52  ;;  %v3872_v52 = vld [vmem:[%s5321_s3 + $0x668] ss:$16 sps:$4 sm:$0xff]  }
 0x273   :  { %2873 = vmatpush1.bf16.msra.mxu1 %v3803_v53  ;;  %v3877_v53 = vld [vmem:[%s5321_s3 + $0x684] ss:$16 sps:$4 sm:$0xff]  }
 0x274   :  { %3037 = vmatpush1.bf16.msra.mxu0 %v3806_v54  ;;  %2874 = vmatprep.subr.bf16.mxu1 %v3811_v55  ;;  %v3880_v54 = vld [vmem:[%s5321_s3 + $0x68c] ss:$16 sps:$4 sm:$0xff]   ;;  %v343_v55 = vrot.slane %v4673_v58, %v342_v50 }
 0x275   :  { %3038 = vmatprep.subr.bf16.mxu0 %v3814_v57  ;;  %v3875_v57 = vld [vmem:[%s5321_s3 + $0x680] ss:$16 sps:$4 sm:$0xff]   ;;  %v3886_v58 = vld [vmem:[%s5321_s3 + $0x6ac] ss:$16 sps:$4 sm:$0xff]  }
 0x277   :  { %2875 = vmatpush1.bf16.msra.mxu1 %v3809_v60  ;;  %v3878_v60 = vld [vmem:[%s5321_s3 + $0x688] ss:$16 sps:$4 sm:$0xff]  }
 0x278   :  { %3039 = vmatpush1.bf16.msra.mxu0 %v3812_v62  ;;  %2876 = vmatprep.subr.bf16.mxu1 %v3817_v61  ;;  %v3883_v62 = vld [vmem:[%s5321_s3 + $0x6a4] ss:$16 sps:$4 sm:$0xff]   ;;  %v5167_v61 = vadd.f32 %v4787_v10, %v343_v55  ;;  %v3892_v10 = vld [vmem:[%s5321_s3 + $0x6cc] ss:$16 sps:$4 sm:$0xff]  }
 0x279   :  { %3040 = vmatprep.subr.bf16.mxu0 %v3820_v63  ;;  %v3881_v63 = vld [vmem:[%s5321_s3 + $0x6a0] ss:$16 sps:$4 sm:$0xff]  }
 0x27b   :  { %2877 = vmatpush1.bf16.msra.mxu1 %v3815_v0  ;;  %v3884_v0 = vld [vmem:[%s5321_s3 + $0x6a8] ss:$16 sps:$4 sm:$0xff]  }
 0x27c   :  { %3041 = vmatpush1.bf16.msra.mxu0 %v3818_v2  ;;  %2878 = vmatprep.subr.bf16.mxu1 %v3823_v3  ;;  %v1166_v2 = vsub.f32 0.0, %v5167_v61  ;;  %v3887_v3 = vld [vmem:[%s5321_s3 + $0x6c0] ss:$16 sps:$4 sm:$0xff]  }
 0x27d   :  { %3042 = vmatprep.subr.bf16.mxu0 %v3826_v4  ;;  %v3890_v4 = vld [vmem:[%s5321_s3 + $0x6c8] ss:$16 sps:$4 sm:$0xff]  }
 0x27f   :  { %2879 = vmatpush1.bf16.msra.mxu1 %v3821_v56  ;;  %v1180_v56 = vmul.f32 1.442695, %v1166_v2 }
 0x280   :  { %3043 = vmatpush1.bf16.msra.mxu0 %v3824_v7  ;;  %2880 = vmatprep.subr.bf16.mxu1 %v3829_v8  ;;  %v3893_v7 = vld [vmem:[%s5321_s3 + $0x6e0] ss:$16 sps:$4 sm:$0xff]   ;;  %v3896_v8 = vld [vmem:[%s5321_s3 + $0x6e8] ss:$16 sps:$4 sm:$0xff]  }
 0x281   :  { %3044 = vmatprep.subr.bf16.mxu0 %v3832_v12  ;;  %v3904_v12 = vld [vmem:[%s5321_s3 + $0x70c] ss:$16 sps:$4 sm:$0xff]   ;;  %3983 = vpow2.f32 %v1180_v56 }
 0x283   :  { %2881 = vmatpush1.bf16.msra.mxu1 %v3827_v13  ;;  %v3899_v13 = vld [vmem:[%s5321_s3 + $0x700] ss:$16 sps:$4 sm:$0xff]  }
 0x284   :  { %3045 = vmatpush1.bf16.msra.mxu0 %v3830_v15  ;;  %2882 = vmatprep.subr.bf16.mxu1 %v3835_v16  ;;  %v3902_v15 = vld [vmem:[%s5321_s3 + $0x708] ss:$16 sps:$4 sm:$0xff]   ;;  %v3907_v16 = vld [vmem:[%s5321_s3 + $0x724] ss:$16 sps:$4 sm:$0xff]  }
 0x285   :  { %3046 = vmatprep.subr.bf16.mxu0 %v3838_v17  ;;  %v3910_v17 = vld [vmem:[%s5321_s3 + $0x72c] ss:$16 sps:$4 sm:$0xff]  }
 0x287   :  { %2883 = vmatpush1.bf16.msra.mxu1 %v3833_v18  ;;  %v3905_v18 = vld [vmem:[%s5321_s3 + $0x720] ss:$16 sps:$4 sm:$0xff]  }
 0x288   :  { %3047 = vmatpush1.bf16.msra.mxu0 %v3836_v19  ;;  %2884 = vmatprep.subr.bf16.mxu1 %v3841_v20  ;;  %v3908_v19 = vld [vmem:[%s5321_s3 + $0x728] ss:$16 sps:$4 sm:$0xff]   ;;  %v3913_v20 = vld [vmem:[%s5321_s3 + $0x744] ss:$16 sps:$4 sm:$0xff]  }
 0x289   :  { %3048 = vmatprep.subr.bf16.mxu0 %v3844_v21  ;;  %v3916_v21 = vld [vmem:[%s5321_s3 + $0x74c] ss:$16 sps:$4 sm:$0xff]  }
 0x28b   :  { %2885 = vmatpush1.bf16.msra.mxu1 %v3839_v22  ;;  %v3911_v22 = vld [vmem:[%s5321_s3 + $0x740] ss:$16 sps:$4 sm:$0xff]  }
 0x28c   :  { %3049 = vmatpush1.bf16.msra.mxu0 %v3842_v23  ;;  %2886 = vmatprep.subr.bf16.mxu1 %v3847_v24  ;;  %v3984_v23 = vpop.eup %3983  ;;  %v3914_v24 = vld [vmem:[%s5321_s3 + $0x748] ss:$16 sps:$4 sm:$0xff]  }
 0x28d   :  { %3050 = vmatprep.subr.bf16.mxu0 %v3850_v26  ;;  %v3922_v26 = vld [vmem:[%s5321_s3 + $0x76c] ss:$16 sps:$4 sm:$0xff]   ;;  %v1190_v27 = vadd.f32 1.0, %v3984_v23 }
 0x28f   :  { %2887 = vmatpush1.bf16.msra.mxu1 %v3845_v30  ;;  %v3917_v30 = vld [vmem:[%s5321_s3 + $0x760] ss:$16 sps:$4 sm:$0xff]   ;;  %3985 = vrcp.f32 %v1190_v27 }
 0x290   :  { %3051 = vmatpush1.bf16.msra.mxu0 %v3848_v33  ;;  %2897 = vmatprep.subr.bf16.mxu1 %v3853_v34  ;;  %v3925_v33 = vld [vmem:[%s5321_s3 + $0x784] ss:$16 sps:$4 sm:$0xff]   ;;  %v3928_v34 = vld [vmem:[%s5321_s3 + $0x78c] ss:$16 sps:$4 sm:$0xff]  }
 0x291   :  { %3061 = vmatprep.subr.bf16.mxu0 %v3856_v35  ;;  %v3923_v35 = vld [vmem:[%s5321_s3 + $0x780] ss:$16 sps:$4 sm:$0xff]  }
 0x292   :  { %2889 = vmatmul.mubr.bf16.vlgmr.msra.gmra.mrb[8].mxu1 %v1212_v39 }
 0x293   :  { %3053 = vmatmul.mubr.bf16.vlgmr.msra.gmra.mrb[12].mxu0 %v1212_v39  ;;  %2898 = vmatpush1.bf16.msra.mxu1 %v3851_v36  ;;  %v3931_v36 = vld [vmem:[%s5321_s3 + $0x7a4] ss:$16 sps:$4 sm:$0xff]   ;;  %v3934_v39 = vld [vmem:[%s5321_s3 + $0x7ac] ss:$16 sps:$4 sm:$0xff]  }
 0x294   :  { %2929 = vmatprep.mubr.bf16.mxu1 %v1215_v41  ;;  %3062 = vmatpush1.bf16.msra.mxu0 %v3854_v40  ;;  %v3929_v40 = vld [vmem:[%s5321_s3 + $0x7a0] ss:$16 sps:$4 sm:$0xff]  }
 0x295   :  { %3093 = vmatprep.mubr.bf16.mxu0 %v1215_v41  ;;  %2899 = vmatprep.subr.bf16.mxu1 %v3859_v9  ;;  %v3932_v9 = vld [vmem:[%s5321_s3 + $0x7a8] ss:$16 sps:$4 sm:$0xff]   ;;  %v3937_v41 = vld [vmem:[%s5321_s3 + $0x7c4] ss:$16 sps:$4 sm:$0xff]  }
 0x296   :  { %3063 = vmatprep.subr.bf16.mxu0 %v3862_v38  ;;  %v3940_v38 = vld [vmem:[%s5321_s3 + $0x7cc] ss:$16 sps:$4 sm:$0xff]  }
 0x297   :  { %2900 = vmatpush1.bf16.msra.mxu1 %v3857_v14  ;;  %v3935_v14 = vld [vmem:[%s5321_s3 + $0x7c0] ss:$16 sps:$4 sm:$0xff]  }
 0x298   :  { %3064 = vmatpush1.bf16.msra.mxu0 %v3860_v42  ;;  %2901 = vmatprep.subr.bf16.mxu1 %v3865_v43  ;;  %v3938_v42 = vld [vmem:[%s5321_s3 + $0x7c8] ss:$16 sps:$4 sm:$0xff]   ;;  %v3943_v43 = vld [vmem:[%s5321_s3 + $0x7e4] ss:$16 sps:$4 sm:$0xff]  }
 0x299   :  { %3065 = vmatprep.subr.bf16.mxu0 %v3868_v44  ;;  %v3986_v44 = vpop.eup %3985 }
 0x29b   :  { %2902 = vmatpush1.bf16.msra.mxu1 %v3863_v45  ;;  %v3946_v45 = vld [vmem:[%s5321_s3 + $0x7ec] ss:$16 sps:$4 sm:$0xff]  }
 0x29c   :  { %3066 = vmatpush1.bf16.msra.mxu0 %v3866_v47  ;;  %2903 = vmatprep.subr.bf16.mxu1 %v3871_v48  ;;  %v3941_v47 = vld [vmem:[%s5321_s3 + $0x7e0] ss:$16 sps:$4 sm:$0xff]   ;;  %v1206_v48 = vmul.f32 %v3986_v44, %v5167_v61 }
 0x29d   :  { %3067 = vmatprep.subr.bf16.mxu0 %v3874_v49  ;;  %v3944_v49 = vld [vmem:[%s5321_s3 + $0x7e8] ss:$16 sps:$4 sm:$0xff]  }
 0x29e   :  { %v1214_v50 = vpack.c.bf16 %v1206_v48, %v1206_v48 }
 0x29f   :  { %2904 = vmatpush1.bf16.msra.mxu1 %v3869_v51  ;;  %v1472_v51 = vld [vmem:[%s5322_s4 + $0xa] sm:$0xf] }
 0x2a0   :  { %3068 = vmatpush1.bf16.msra.mxu0 %v3872_v52  ;;  %2905 = vmatprep.subr.bf16.mxu1 %v3877_v53  ;;  %v1477_v52 = vrot.slane %v1472_v51, %v4276_v29  ;;  %v1485_v53 = vrot.slane %v1472_v51, %v326_v46  ;;  %v1489_v55 = vrot.slane %v1472_v51, %v330_v59 }
 0x2a1   :  { %3069 = vmatprep.subr.bf16.mxu0 %v3880_v54  ;;  %v1481_v54 = vrot.slane %v1472_v51, %v4282_v31 }
 0x2a3   :  { %2906 = vmatpush1.bf16.msra.mxu1 %v3875_v57 }
 0x2a4   :  { %3070 = vmatpush1.bf16.msra.mxu0 %v3878_v60  ;;  %2907 = vmatprep.subr.bf16.mxu1 %v3883_v62 }
 0x2a5   :  { %3071 = vmatprep.subr.bf16.mxu0 %v3886_v58 }
 0x2a7   :  { %2908 = vmatpush1.bf16.msra.mxu1 %v3881_v63 }
 0x2a8   :  { %3072 = vmatpush1.bf16.msra.mxu0 %v3884_v0  ;;  %2909 = vmatprep.subr.bf16.mxu1 %v3889_v1 }
 0x2a9   :  { %3073 = vmatprep.subr.bf16.mxu0 %v3892_v10 }
 0x2ab   :  { %2910 = vmatpush1.bf16.msra.mxu1 %v3887_v3 }
 0x2ac   :  { %3074 = vmatpush1.bf16.msra.mxu0 %v3890_v4  ;;  %2911 = vmatprep.subr.bf16.mxu1 %v3895_v5 }
 0x2ad   :  { %3075 = vmatprep.subr.bf16.mxu0 %v3898_v6 }
 0x2af   :  { %2912 = vmatpush1.bf16.msra.mxu1 %v3893_v7 }
 0x2b0   :  { %3076 = vmatpush1.bf16.msra.mxu0 %v3896_v8  ;;  %2913 = vmatprep.subr.bf16.mxu1 %v3901_v11 }
 0x2b1   :  { %3077 = vmatprep.subr.bf16.mxu0 %v3904_v12 }
 0x2b3   :  { %2914 = vmatpush1.bf16.msra.mxu1 %v3899_v13 }
 0x2b4   :  { %3078 = vmatpush1.bf16.msra.mxu0 %v3902_v15  ;;  %2915 = vmatprep.subr.bf16.mxu1 %v3907_v16 }
 0x2b5   :  { %3079 = vmatprep.subr.bf16.mxu0 %v3910_v17 }
 0x2b7   :  { %2916 = vmatpush1.bf16.msra.mxu1 %v3905_v18 }
 0x2b8   :  { %3080 = vmatpush1.bf16.msra.mxu0 %v3908_v19  ;;  %2917 = vmatprep.subr.bf16.mxu1 %v3913_v20 }
 0x2b9   :  { %3081 = vmatprep.subr.bf16.mxu0 %v3916_v21 }
 0x2bb   :  { %2918 = vmatpush1.bf16.msra.mxu1 %v3911_v22 }
 0x2bc   :  { %3082 = vmatpush1.bf16.msra.mxu0 %v3914_v24  ;;  %2919 = vmatprep.subr.bf16.mxu1 %v3919_v25 }
 0x2bd   :  { %3083 = vmatprep.subr.bf16.mxu0 %v3922_v26 }
 0x2bf   :  { %2920 = vmatpush1.bf16.msra.mxu1 %v3917_v30 }
 0x2c0   :  { %3084 = vmatpush1.bf16.msra.mxu0 %v3920_v32  ;;  %2921 = vmatprep.subr.bf16.mxu1 %v3925_v33 }
 0x2c1   :  { %3085 = vmatprep.subr.bf16.mxu0 %v3928_v34 }
 0x2c3   :  { %2922 = vmatpush1.bf16.msra.mxu1 %v3923_v35 }
 0x2c4   :  { %3086 = vmatpush1.bf16.msra.mxu0 %v3926_v37  ;;  %2923 = vmatprep.subr.bf16.mxu1 %v3931_v36 }
 0x2c5   :  { %3087 = vmatprep.subr.bf16.mxu0 %v3934_v39 }
 0x2c7   :  { %2924 = vmatpush1.bf16.msra.mxu1 %v3929_v40 }
 0x2c8   :  { %3088 = vmatpush1.bf16.msra.mxu0 %v3932_v9  ;;  %2925 = vmatprep.subr.bf16.mxu1 %v3937_v41 }
 0x2c9   :  { %3089 = vmatprep.subr.bf16.mxu0 %v3940_v38 }
 0x2cb   :  { %2926 = vmatpush1.bf16.msra.mxu1 %v3935_v14 }
 0x2cc   :  { %3090 = vmatpush1.bf16.msra.mxu0 %v3938_v42  ;;  %2927 = vmatprep.subr.bf16.mxu1 %v3943_v43 }
 0x2cd   :  { %3091 = vmatprep.subr.bf16.mxu0 %v3946_v45 }
 0x2cf   :  { %2928 = vmatpush1.bf16.msra.mxu1 %v3941_v47 }
 0x2d0   :  { %3092 = vmatpush1.bf16.msra.mxu0 %v3944_v49 }
 0x2d2   :  { %2930 = vmatmul.mubr.bf16.vlgmr.msra.gmra.mrb[8].mxu1 %v1214_v50 }
 0x2d3   :  { %3094 = vmatmul.mubr.bf16.vlgmr.msra.gmra.mrb[12].mxu0 %v1214_v50 }
 0x3a5   :  { %v2931_v57 = vpop.f32.mrb[8].mxu1 }
 0x3a6   :  { %v3510_v60 = vadd.f32 %v2931_v57, %v1477_v52  ;;  %v3095_v62 = vpop.f32.mrb[12].mxu0  ;;  %v2933_v58 = vpop.f32.mrb[9].mxu1 }
 0x3a7   :  { %v3512_v61 = vadd.f32 %v3095_v62, %v1485_v53  ;;  %v3511_v63 = vadd.f32 %v2933_v58, %v1481_v54  ;;  %v3097_v0 = vpop.f32.mrb[13].mxu0  ;;  %v2935_v1 = vpop.f32.mrb[10].mxu1 }
 0x3a8   :  { %3102 = vst [vmem:[%s5323_s5] sm:$0xff] %v3510_v60  ;;  %v3513_v29 = vadd.f32 %v3097_v0, %v1489_v55  ;;  %v3099_v10 = vpop.f32.mrb[14].mxu0  ;;  %v2936_v46 = vpop.f32.mrb[11].mxu1 }
 0x3a9   :  { %3104 = vst [vmem:[%s5323_s5 + $0x10] sm:$0xff] %v3512_v61  ;;  %3103 = vst [vmem:[%s5323_s5 + $0x8] sm:$0xff] %v3511_v63  ;;  %v3100_v28 = vpop.f32.mrb[15].mxu0 }
 0x3aa   :  { %3105 = vst [vmem:[%s5323_s5 + $0x18] sm:$0xff] %v3513_v29 }

</bundles_post_ra>
